<compile_context>
chip_gen: v7x
topology: tpu7x:2x2x1
jax: 0.10.0
libtpu: 0.0.40
codegen_flags: <defaults>
</compile_context>

<pallas_src>
import jax
import jax.numpy as jnp
import numpy as np
from jax import lax
from jax.experimental import pallas as pl
from jax.experimental.pallas import tpu as pltpu


def lstm_recurrence_kernel(gx_ref, whh_t_ref, h_out_ref):
    """Serial LSTM recurrence for one batch block.

    gx_ref    : (T, Bb, 4H)  precomputed x_t @ W_ih^T + (b_ih + b_hh)
    whh_t_ref : (H, 4H)      pre-transposed recurrent weight W_hh^T
    h_out_ref : (Bb, H)      last hidden state h_T for this batch block
    """
    T, Bb, _ = gx_ref.shape
    H = whh_t_ref.shape[0]

    w_hh_t = whh_t_ref[...]                       # load once; resident for the whole loop

    def step(t, carry):
        h, c = carry
        # only the h-dependent matmul sits on the serial path
        gates = gx_ref[t] + jnp.dot(h, w_hh_t, preferred_element_type=jnp.float32)
        # PyTorch gate order: i, f, g, o  (slices at multiples of H -> lane-aligned for H % 128 == 0)
        i_g = jax.nn.sigmoid(gates[:, 0:H])
        f_g = jax.nn.sigmoid(gates[:, H:2 * H])
        g_g = jnp.tanh(gates[:, 2 * H:3 * H])
        o_g = jax.nn.sigmoid(gates[:, 3 * H:4 * H])
        c_new = f_g * c + i_g * g_g
        h_new = o_g * jnp.tanh(c_new)
        return h_new, c_new

    h0 = jnp.zeros((Bb, H), jnp.float32)
    c0 = jnp.zeros((Bb, H), jnp.float32)
    # T is small and static here -> full unroll gives the LLO scheduler visibility.
    h_last, _ = lax.fori_loop(0, T, step, (h0, c0), unroll=True)
    h_out_ref[...] = h_last


def lstm_classifier_forward(tokens, params, *, batch_block=8):
    """tokens: (B, T) int32. Returns logits (B, n_classes) float32 (eval mode)."""
    emb = params["embedding"][tokens]             # (B, T, E) gather (glue, plain JAX)
    x = jnp.transpose(emb, (1, 0, 2))             # (T, B, E)  == torch.transpose(., 0, 1)
    T, B, E = x.shape
    H = params["w_hh"].shape[1]

    # (1) pre-transpose weights once, outside the kernel
    w_ih_t = jnp.transpose(params["w_ih"])        # (E, 4H)
    w_hh_t = jnp.transpose(params["w_hh"])        # (H, 4H)

    # (2) hoist the input projection out of the recurrence: one big MXU matmul over
    #     all T*B rows, with the combined LSTM bias folded in (no per-step bias add).
    bias = (params["b_ih"] + params["b_hh"])[None, :]                    # (1, 4H)
    gates_x = (x.reshape(T * B, E) @ w_ih_t + bias).reshape(T, B, 4 * H)

    # (3) recurrence kernel: grid over batch blocks only; the time loop lives inside
    #     the kernel with gates_x resident in VMEM.
    bb = min(batch_block, B)
    assert B % bb == 0 and bb % 8 == 0, "batch must tile into multiples of 8 rows"
    n_blk = B // bb

    h_last = pl.pallas_call(
        lstm_recurrence_kernel,
        out_shape=jax.ShapeDtypeStruct((B, H), jnp.float32),
        grid_spec=pltpu.PrefetchScalarGridSpec(
            num_scalar_prefetch=0,
            grid=(n_blk,),
            in_specs=[
                pl.BlockSpec((T, bb, 4 * H), lambda b: (0, b, 0)),   # gates_x batch block
                pl.BlockSpec((H, 4 * H), lambda b: (0, 0)),          # W_hh^T (whole)
            ],
            out_specs=pl.BlockSpec((bb, H), lambda b: (b, 0)),
        ),
        compiler_params=pltpu.CompilerParams(
            dimension_semantics=("parallel",)),      # independent batch blocks -> v7x megacore
    )(gates_x, w_hh_t)

    # (4) classifier head outside the recurrent kernel; dropout(p=0.1) is identity in eval.
    hid = h_last @ params["w_hid"].T + params["b_hid"]
    logits = hid @ params["w_lin"].T + params["b_lin"]
    return logits


def reference_forward(tokens, params):
    """Pure-JAX reference of the same forward pass (for verification)."""
    emb = params["embedding"][tokens]
    x = jnp.transpose(emb, (1, 0, 2))
    T, B, E = x.shape
    H = params["w_hh"].shape[1]
    h = jnp.zeros((B, H), jnp.float32)
    c = jnp.zeros((B, H), jnp.float32)
    for t in range(T):
        g = x[t] @ params["w_ih"].T + h @ params["w_hh"].T + params["b_ih"] + params["b_hh"]
        i = jax.nn.sigmoid(g[:, 0:H])
        f = jax.nn.sigmoid(g[:, H:2 * H])
        gg = jnp.tanh(g[:, 2 * H:3 * H])
        o = jax.nn.sigmoid(g[:, 3 * H:4 * H])
        c = f * c + i * gg
        h = o * jnp.tanh(c)
    hid = h @ params["w_hid"].T + params["b_hid"]
    return hid @ params["w_lin"].T + params["b_lin"]


if __name__ == "__main__":
    # Small, module-consistent shapes (real module: E=300, H=256, n_classes=2).
    # H is kept a multiple of 128 so gate slices are lane-aligned, matching the
    # alignment the real H=256 module has.
    vocab_size = 50
    embedding_dim = 64
    hidden_size = 128
    n_classes = 2
    B, T = 8, 8

    key = jax.random.PRNGKey(0)
    ks = jax.random.split(key, 10)
    s = 0.1
    params = {
        "embedding": jax.random.normal(ks[0], (vocab_size, embedding_dim), jnp.float32) * s,
        "w_ih": jax.random.normal(ks[1], (4 * hidden_size, embedding_dim), jnp.float32) * s,
        "w_hh": jax.random.normal(ks[2], (4 * hidden_size, hidden_size), jnp.float32) * s,
        "b_ih": jax.random.normal(ks[3], (4 * hidden_size,), jnp.float32) * s,
        "b_hh": jax.random.normal(ks[4], (4 * hidden_size,), jnp.float32) * s,
        "w_hid": jax.random.normal(ks[5], (hidden_size, hidden_size), jnp.float32) * s,
        "b_hid": jax.random.normal(ks[6], (hidden_size,), jnp.float32) * s,
        "w_lin": jax.random.normal(ks[7], (n_classes, hidden_size), jnp.float32) * s,
        "b_lin": jax.random.normal(ks[8], (n_classes,), jnp.float32) * s,
    }

    tokens = jax.random.randint(ks[9], (B, T), 0, vocab_size, dtype=jnp.int32)

    logits = lstm_classifier_forward(tokens, params)
    logits = jax.block_until_ready(logits)

    ref = reference_forward(tokens, params)
    np.testing.assert_allclose(np.asarray(logits), np.asarray(ref), rtol=1e-4, atol=1e-4)

    print("KERNEL_OK")
</pallas_src>

<mosaic_0001>
module attributes {stable_mosaic.version = 11 : i64} {
  func.func @lstm_recurrence_kernel(%arg0: i32, %arg1: memref<8x8x512xf32, #tpu.memory_space<vmem>>, %arg2: memref<128x512xf32, #tpu.memory_space<vmem>>, %arg3: memref<8x128xf32, #tpu.memory_space<vmem>>) attributes {dimension_semantics = [#tpu.dimension_semantics<parallel>], iteration_bounds = array<i64: 1>, scalar_prefetch = 0 : i64, scratch_operands = 0 : i64, tpu.core_type = #tpu.core_type<tc>, window_params = [{transform_indices = @transform_0, window_bounds = array<i64: 8, 8, 512>}, {pipeline_mode = #tpu.pipeline_mode<synchronous>, transform_indices = @transform_1, window_bounds = array<i64: 128, 512>}, {transform_indices = @transform_2, window_bounds = array<i64: 8, 128>}]} {
    %c0 = arith.constant 0 : index
    %c0_0 = arith.constant 0 : index
    %0 = vector.load %arg2[%c0, %c0_0] : memref<128x512xf32, #tpu.memory_space<vmem>>, vector<128x512xf32>
    %cst = arith.constant 0.000000e+00 : f32
    %1 = vector.broadcast %cst : f32 to vector<8x128xf32>
    %cst_1 = arith.constant 0.000000e+00 : f32
    %2 = vector.broadcast %cst_1 : f32 to vector<8x128xf32>
    %c0_i32 = arith.constant 0 : i32
    %3 = arith.index_cast %c0_i32 : i32 to index
    %c0_2 = arith.constant 0 : index
    %c0_3 = arith.constant 0 : index
    %4 = vector.load %arg1[%3, %c0_2, %c0_3] : memref<8x8x512xf32, #tpu.memory_space<vmem>>, vector<1x8x512xf32>
    %5 = vector.shape_cast %4 : vector<1x8x512xf32> to vector<8x512xf32>
    %cst_4 = arith.constant dense<0.000000e+00> : vector<8x512xf32>
    %6 = tpu.matmul %1, %0, %cst_4 {dimension_numbers = #tpu.dot_dimension_numbers<[1], [0], [0], [1], [0, 0, 1, 1], [], []>} : vector<8x128xf32>, vector<128x512xf32>, vector<8x512xf32> -> vector<8x512xf32>
    %7 = arith.addf %5, %6 : vector<8x512xf32>
    %8 = vector.extract_strided_slice %7 {offsets = [0, 0], sizes = [8, 128], strides = [1, 1]} : vector<8x512xf32> to vector<8x128xf32>
    %9 = arith.negf %8 : vector<8x128xf32>
    %10 = math.exp %9 : vector<8x128xf32>
    %cst_5 = arith.constant 1.000000e+00 : f32
    %11 = vector.broadcast %cst_5 : f32 to vector<8x128xf32>
    %12 = arith.addf %11, %10 : vector<8x128xf32>
    %13 = arith.divf %11, %12 : vector<8x128xf32>
    %14 = vector.extract_strided_slice %7 {offsets = [0, 128], sizes = [8, 128], strides = [1, 1]} : vector<8x512xf32> to vector<8x128xf32>
    %15 = arith.negf %14 : vector<8x128xf32>
    %16 = math.exp %15 : vector<8x128xf32>
    %cst_6 = arith.constant 1.000000e+00 : f32
    %17 = vector.broadcast %cst_6 : f32 to vector<8x128xf32>
    %18 = arith.addf %17, %16 : vector<8x128xf32>
    %19 = arith.divf %17, %18 : vector<8x128xf32>
    %20 = vector.extract_strided_slice %7 {offsets = [0, 256], sizes = [8, 128], strides = [1, 1]} : vector<8x512xf32> to vector<8x128xf32>
    %21 = math.tanh %20 : vector<8x128xf32>
    %22 = vector.extract_strided_slice %7 {offsets = [0, 384], sizes = [8, 128], strides = [1, 1]} : vector<8x512xf32> to vector<8x128xf32>
    %23 = arith.negf %22 : vector<8x128xf32>
    %24 = math.exp %23 : vector<8x128xf32>
    %cst_7 = arith.constant 1.000000e+00 : f32
    %25 = vector.broadcast %cst_7 : f32 to vector<8x128xf32>
    %26 = arith.addf %25, %24 : vector<8x128xf32>
    %27 = arith.divf %25, %26 : vector<8x128xf32>
    %28 = arith.mulf %19, %2 : vector<8x128xf32>
    %29 = arith.mulf %13, %21 : vector<8x128xf32>
    %30 = arith.addf %28, %29 : vector<8x128xf32>
    %31 = math.tanh %30 : vector<8x128xf32>
    %32 = arith.mulf %27, %31 : vector<8x128xf32>
    %c1_i32 = arith.constant 1 : i32
    %33 = arith.index_cast %c1_i32 : i32 to index
    %c0_8 = arith.constant 0 : index
    %c0_9 = arith.constant 0 : index
    %34 = vector.load %arg1[%33, %c0_8, %c0_9] : memref<8x8x512xf32, #tpu.memory_space<vmem>>, vector<1x8x512xf32>
    %35 = vector.shape_cast %34 : vector<1x8x512xf32> to vector<8x512xf32>
    %cst_10 = arith.constant dense<0.000000e+00> : vector<8x512xf32>
    %36 = tpu.matmul %32, %0, %cst_10 {dimension_numbers = #tpu.dot_dimension_numbers<[1], [0], [0], [1], [0, 0, 1, 1], [], []>} : vector<8x128xf32>, vector<128x512xf32>, vector<8x512xf32> -> vector<8x512xf32>
    %37 = arith.addf %35, %36 : vector<8x512xf32>
    %38 = vector.extract_strided_slice %37 {offsets = [0, 0], sizes = [8, 128], strides = [1, 1]} : vector<8x512xf32> to vector<8x128xf32>
    %39 = arith.negf %38 : vector<8x128xf32>
    %40 = math.exp %39 : vector<8x128xf32>
    %cst_11 = arith.constant 1.000000e+00 : f32
    %41 = vector.broadcast %cst_11 : f32 to vector<8x128xf32>
    %42 = arith.addf %41, %40 : vector<8x128xf32>
    %43 = arith.divf %41, %42 : vector<8x128xf32>
    %44 = vector.extract_strided_slice %37 {offsets = [0, 128], sizes = [8, 128], strides = [1, 1]} : vector<8x512xf32> to vector<8x128xf32>
    %45 = arith.negf %44 : vector<8x128xf32>
    %46 = math.exp %45 : vector<8x128xf32>
    %cst_12 = arith.constant 1.000000e+00 : f32
    %47 = vector.broadcast %cst_12 : f32 to vector<8x128xf32>
    %48 = arith.addf %47, %46 : vector<8x128xf32>
    %49 = arith.divf %47, %48 : vector<8x128xf32>
    %50 = vector.extract_strided_slice %37 {offsets = [0, 256], sizes = [8, 128], strides = [1, 1]} : vector<8x512xf32> to vector<8x128xf32>
    %51 = math.tanh %50 : vector<8x128xf32>
    %52 = vector.extract_strided_slice %37 {offsets = [0, 384], sizes = [8, 128], strides = [1, 1]} : vector<8x512xf32> to vector<8x128xf32>
    %53 = arith.negf %52 : vector<8x128xf32>
    %54 = math.exp %53 : vector<8x128xf32>
    %cst_13 = arith.constant 1.000000e+00 : f32
    %55 = vector.broadcast %cst_13 : f32 to vector<8x128xf32>
    %56 = arith.addf %55, %54 : vector<8x128xf32>
    %57 = arith.divf %55, %56 : vector<8x128xf32>
    %58 = arith.mulf %49, %30 : vector<8x128xf32>
    %59 = arith.mulf %43, %51 : vector<8x128xf32>
    %60 = arith.addf %58, %59 : vector<8x128xf32>
    %61 = math.tanh %60 : vector<8x128xf32>
    %62 = arith.mulf %57, %61 : vector<8x128xf32>
    %c2_i32 = arith.constant 2 : i32
    %63 = arith.index_cast %c2_i32 : i32 to index
    %c0_14 = arith.constant 0 : index
    %c0_15 = arith.constant 0 : index
    %64 = vector.load %arg1[%63, %c0_14, %c0_15] : memref<8x8x512xf32, #tpu.memory_space<vmem>>, vector<1x8x512xf32>
    %65 = vector.shape_cast %64 : vector<1x8x512xf32> to vector<8x512xf32>
    %cst_16 = arith.constant dense<0.000000e+00> : vector<8x512xf32>
    %66 = tpu.matmul %62, %0, %cst_16 {dimension_numbers = #tpu.dot_dimension_numbers<[1], [0], [0], [1], [0, 0, 1, 1], [], []>} : vector<8x128xf32>, vector<128x512xf32>, vector<8x512xf32> -> vector<8x512xf32>
    %67 = arith.addf %65, %66 : vector<8x512xf32>
    %68 = vector.extract_strided_slice %67 {offsets = [0, 0], sizes = [8, 128], strides = [1, 1]} : vector<8x512xf32> to vector<8x128xf32>
    %69 = arith.negf %68 : vector<8x128xf32>
    %70 = math.exp %69 : vector<8x128xf32>
    %cst_17 = arith.constant 1.000000e+00 : f32
    %71 = vector.broadcast %cst_17 : f32 to vector<8x128xf32>
    %72 = arith.addf %71, %70 : vector<8x128xf32>
    %73 = arith.divf %71, %72 : vector<8x128xf32>
    %74 = vector.extract_strided_slice %67 {offsets = [0, 128], sizes = [8, 128], strides = [1, 1]} : vector<8x512xf32> to vector<8x128xf32>
    %75 = arith.negf %74 : vector<8x128xf32>
    %76 = math.exp %75 : vector<8x128xf32>
    %cst_18 = arith.constant 1.000000e+00 : f32
    %77 = vector.broadcast %cst_18 : f32 to vector<8x128xf32>
    %78 = arith.addf %77, %76 : vector<8x128xf32>
    %79 = arith.divf %77, %78 : vector<8x128xf32>
    %80 = vector.extract_strided_slice %67 {offsets = [0, 256], sizes = [8, 128], strides = [1, 1]} : vector<8x512xf32> to vector<8x128xf32>
    %81 = math.tanh %80 : vector<8x128xf32>
    %82 = vector.extract_strided_slice %67 {offsets = [0, 384], sizes = [8, 128], strides = [1, 1]} : vector<8x512xf32> to vector<8x128xf32>
    %83 = arith.negf %82 : vector<8x128xf32>
    %84 = math.exp %83 : vector<8x128xf32>
    %cst_19 = arith.constant 1.000000e+00 : f32
    %85 = vector.broadcast %cst_19 : f32 to vector<8x128xf32>
    %86 = arith.addf %85, %84 : vector<8x128xf32>
    %87 = arith.divf %85, %86 : vector<8x128xf32>
    %88 = arith.mulf %79, %60 : vector<8x128xf32>
    %89 = arith.mulf %73, %81 : vector<8x128xf32>
    %90 = arith.addf %88, %89 : vector<8x128xf32>
    %91 = math.tanh %90 : vector<8x128xf32>
    %92 = arith.mulf %87, %91 : vector<8x128xf32>
    %c3_i32 = arith.constant 3 : i32
    %93 = arith.index_cast %c3_i32 : i32 to index
    %c0_20 = arith.constant 0 : index
    %c0_21 = arith.constant 0 : index
    %94 = vector.load %arg1[%93, %c0_20, %c0_21] : memref<8x8x512xf32, #tpu.memory_space<vmem>>, vector<1x8x512xf32>
    %95 = vector.shape_cast %94 : vector<1x8x512xf32> to vector<8x512xf32>
    %cst_22 = arith.constant dense<0.000000e+00> : vector<8x512xf32>
    %96 = tpu.matmul %92, %0, %cst_22 {dimension_numbers = #tpu.dot_dimension_numbers<[1], [0], [0], [1], [0, 0, 1, 1], [], []>} : vector<8x128xf32>, vector<128x512xf32>, vector<8x512xf32> -> vector<8x512xf32>
    %97 = arith.addf %95, %96 : vector<8x512xf32>
    %98 = vector.extract_strided_slice %97 {offsets = [0, 0], sizes = [8, 128], strides = [1, 1]} : vector<8x512xf32> to vector<8x128xf32>
    %99 = arith.negf %98 : vector<8x128xf32>
    %100 = math.exp %99 : vector<8x128xf32>
    %cst_23 = arith.constant 1.000000e+00 : f32
    %101 = vector.broadcast %cst_23 : f32 to vector<8x128xf32>
    %102 = arith.addf %101, %100 : vector<8x128xf32>
    %103 = arith.divf %101, %102 : vector<8x128xf32>
    %104 = vector.extract_strided_slice %97 {offsets = [0, 128], sizes = [8, 128], strides = [1, 1]} : vector<8x512xf32> to vector<8x128xf32>
    %105 = arith.negf %104 : vector<8x128xf32>
    %106 = math.exp %105 : vector<8x128xf32>
    %cst_24 = arith.constant 1.000000e+00 : f32
    %107 = vector.broadcast %cst_24 : f32 to vector<8x128xf32>
    %108 = arith.addf %107, %106 : vector<8x128xf32>
    %109 = arith.divf %107, %108 : vector<8x128xf32>
    %110 = vector.extract_strided_slice %97 {offsets = [0, 256], sizes = [8, 128], strides = [1, 1]} : vector<8x512xf32> to vector<8x128xf32>
    %111 = math.tanh %110 : vector<8x128xf32>
    %112 = vector.extract_strided_slice %97 {offsets = [0, 384], sizes = [8, 128], strides = [1, 1]} : vector<8x512xf32> to vector<8x128xf32>
    %113 = arith.negf %112 : vector<8x128xf32>
    %114 = math.exp %113 : vector<8x128xf32>
    %cst_25 = arith.constant 1.000000e+00 : f32
    %115 = vector.broadcast %cst_25 : f32 to vector<8x128xf32>
    %116 = arith.addf %115, %114 : vector<8x128xf32>
    %117 = arith.divf %115, %116 : vector<8x128xf32>
    %118 = arith.mulf %109, %90 : vector<8x128xf32>
    %119 = arith.mulf %103, %111 : vector<8x128xf32>
    %120 = arith.addf %118, %119 : vector<8x128xf32>
    %121 = math.tanh %120 : vector<8x128xf32>
    %122 = arith.mulf %117, %121 : vector<8x128xf32>
    %c4_i32 = arith.constant 4 : i32
    %123 = arith.index_cast %c4_i32 : i32 to index
    %c0_26 = arith.constant 0 : index
    %c0_27 = arith.constant 0 : index
    %124 = vector.load %arg1[%123, %c0_26, %c0_27] : memref<8x8x512xf32, #tpu.memory_space<vmem>>, vector<1x8x512xf32>
    %125 = vector.shape_cast %124 : vector<1x8x512xf32> to vector<8x512xf32>
    %cst_28 = arith.constant dense<0.000000e+00> : vector<8x512xf32>
    %126 = tpu.matmul %122, %0, %cst_28 {dimension_numbers = #tpu.dot_dimension_numbers<[1], [0], [0], [1], [0, 0, 1, 1], [], []>} : vector<8x128xf32>, vector<128x512xf32>, vector<8x512xf32> -> vector<8x512xf32>
    %127 = arith.addf %125, %126 : vector<8x512xf32>
    %128 = vector.extract_strided_slice %127 {offsets = [0, 0], sizes = [8, 128], strides = [1, 1]} : vector<8x512xf32> to vector<8x128xf32>
    %129 = arith.negf %128 : vector<8x128xf32>
    %130 = math.exp %129 : vector<8x128xf32>
    %cst_29 = arith.constant 1.000000e+00 : f32
    %131 = vector.broadcast %cst_29 : f32 to vector<8x128xf32>
    %132 = arith.addf %131, %130 : vector<8x128xf32>
    %133 = arith.divf %131, %132 : vector<8x128xf32>
    %134 = vector.extract_strided_slice %127 {offsets = [0, 128], sizes = [8, 128], strides = [1, 1]} : vector<8x512xf32> to vector<8x128xf32>
    %135 = arith.negf %134 : vector<8x128xf32>
    %136 = math.exp %135 : vector<8x128xf32>
    %cst_30 = arith.constant 1.000000e+00 : f32
    %137 = vector.broadcast %cst_30 : f32 to vector<8x128xf32>
    %138 = arith.addf %137, %136 : vector<8x128xf32>
    %139 = arith.divf %137, %138 : vector<8x128xf32>
    %140 = vector.extract_strided_slice %127 {offsets = [0, 256], sizes = [8, 128], strides = [1, 1]} : vector<8x512xf32> to vector<8x128xf32>
    %141 = math.tanh %140 : vector<8x128xf32>
    %142 = vector.extract_strided_slice %127 {offsets = [0, 384], sizes = [8, 128], strides = [1, 1]} : vector<8x512xf32> to vector<8x128xf32>
    %143 = arith.negf %142 : vector<8x128xf32>
    %144 = math.exp %143 : vector<8x128xf32>
    %cst_31 = arith.constant 1.000000e+00 : f32
    %145 = vector.broadcast %cst_31 : f32 to vector<8x128xf32>
    %146 = arith.addf %145, %144 : vector<8x128xf32>
    %147 = arith.divf %145, %146 : vector<8x128xf32>
    %148 = arith.mulf %139, %120 : vector<8x128xf32>
    %149 = arith.mulf %133, %141 : vector<8x128xf32>
    %150 = arith.addf %148, %149 : vector<8x128xf32>
    %151 = math.tanh %150 : vector<8x128xf32>
    %152 = arith.mulf %147, %151 : vector<8x128xf32>
    %c5_i32 = arith.constant 5 : i32
    %153 = arith.index_cast %c5_i32 : i32 to index
    %c0_32 = arith.constant 0 : index
    %c0_33 = arith.constant 0 : index
    %154 = vector.load %arg1[%153, %c0_32, %c0_33] : memref<8x8x512xf32, #tpu.memory_space<vmem>>, vector<1x8x512xf32>
    %155 = vector.shape_cast %154 : vector<1x8x512xf32> to vector<8x512xf32>
    %cst_34 = arith.constant dense<0.000000e+00> : vector<8x512xf32>
    %156 = tpu.matmul %152, %0, %cst_34 {dimension_numbers = #tpu.dot_dimension_numbers<[1], [0], [0], [1], [0, 0, 1, 1], [], []>} : vector<8x128xf32>, vector<128x512xf32>, vector<8x512xf32> -> vector<8x512xf32>
    %157 = arith.addf %155, %156 : vector<8x512xf32>
    %158 = vector.extract_strided_slice %157 {offsets = [0, 0], sizes = [8, 128], strides = [1, 1]} : vector<8x512xf32> to vector<8x128xf32>
    %159 = arith.negf %158 : vector<8x128xf32>
    %160 = math.exp %159 : vector<8x128xf32>
    %cst_35 = arith.constant 1.000000e+00 : f32
    %161 = vector.broadcast %cst_35 : f32 to vector<8x128xf32>
    %162 = arith.addf %161, %160 : vector<8x128xf32>
    %163 = arith.divf %161, %162 : vector<8x128xf32>
    %164 = vector.extract_strided_slice %157 {offsets = [0, 128], sizes = [8, 128], strides = [1, 1]} : vector<8x512xf32> to vector<8x128xf32>
    %165 = arith.negf %164 : vector<8x128xf32>
    %166 = math.exp %165 : vector<8x128xf32>
    %cst_36 = arith.constant 1.000000e+00 : f32
    %167 = vector.broadcast %cst_36 : f32 to vector<8x128xf32>
    %168 = arith.addf %167, %166 : vector<8x128xf32>
    %169 = arith.divf %167, %168 : vector<8x128xf32>
    %170 = vector.extract_strided_slice %157 {offsets = [0, 256], sizes = [8, 128], strides = [1, 1]} : vector<8x512xf32> to vector<8x128xf32>
    %171 = math.tanh %170 : vector<8x128xf32>
    %172 = vector.extract_strided_slice %157 {offsets = [0, 384], sizes = [8, 128], strides = [1, 1]} : vector<8x512xf32> to vector<8x128xf32>
    %173 = arith.negf %172 : vector<8x128xf32>
    %174 = math.exp %173 : vector<8x128xf32>
    %cst_37 = arith.constant 1.000000e+00 : f32
    %175 = vector.broadcast %cst_37 : f32 to vector<8x128xf32>
    %176 = arith.addf %175, %174 : vector<8x128xf32>
    %177 = arith.divf %175, %176 : vector<8x128xf32>
    %178 = arith.mulf %169, %150 : vector<8x128xf32>
    %179 = arith.mulf %163, %171 : vector<8x128xf32>
    %180 = arith.addf %178, %179 : vector<8x128xf32>
    %181 = math.tanh %180 : vector<8x128xf32>
    %182 = arith.mulf %177, %181 : vector<8x128xf32>
    %c6_i32 = arith.constant 6 : i32
    %183 = arith.index_cast %c6_i32 : i32 to index
    %c0_38 = arith.constant 0 : index
    %c0_39 = arith.constant 0 : index
    %184 = vector.load %arg1[%183, %c0_38, %c0_39] : memref<8x8x512xf32, #tpu.memory_space<vmem>>, vector<1x8x512xf32>
    %185 = vector.shape_cast %184 : vector<1x8x512xf32> to vector<8x512xf32>
    %cst_40 = arith.constant dense<0.000000e+00> : vector<8x512xf32>
    %186 = tpu.matmul %182, %0, %cst_40 {dimension_numbers = #tpu.dot_dimension_numbers<[1], [0], [0], [1], [0, 0, 1, 1], [], []>} : vector<8x128xf32>, vector<128x512xf32>, vector<8x512xf32> -> vector<8x512xf32>
    %187 = arith.addf %185, %186 : vector<8x512xf32>
    %188 = vector.extract_strided_slice %187 {offsets = [0, 0], sizes = [8, 128], strides = [1, 1]} : vector<8x512xf32> to vector<8x128xf32>
    %189 = arith.negf %188 : vector<8x128xf32>
    %190 = math.exp %189 : vector<8x128xf32>
    %cst_41 = arith.constant 1.000000e+00 : f32
    %191 = vector.broadcast %cst_41 : f32 to vector<8x128xf32>
    %192 = arith.addf %191, %190 : vector<8x128xf32>
    %193 = arith.divf %191, %192 : vector<8x128xf32>
    %194 = vector.extract_strided_slice %187 {offsets = [0, 128], sizes = [8, 128], strides = [1, 1]} : vector<8x512xf32> to vector<8x128xf32>
    %195 = arith.negf %194 : vector<8x128xf32>
    %196 = math.exp %195 : vector<8x128xf32>
    %cst_42 = arith.constant 1.000000e+00 : f32
    %197 = vector.broadcast %cst_42 : f32 to vector<8x128xf32>
    %198 = arith.addf %197, %196 : vector<8x128xf32>
    %199 = arith.divf %197, %198 : vector<8x128xf32>
    %200 = vector.extract_strided_slice %187 {offsets = [0, 256], sizes = [8, 128], strides = [1, 1]} : vector<8x512xf32> to vector<8x128xf32>
    %201 = math.tanh %200 : vector<8x128xf32>
    %202 = vector.extract_strided_slice %187 {offsets = [0, 384], sizes = [8, 128], strides = [1, 1]} : vector<8x512xf32> to vector<8x128xf32>
    %203 = arith.negf %202 : vector<8x128xf32>
    %204 = math.exp %203 : vector<8x128xf32>
    %cst_43 = arith.constant 1.000000e+00 : f32
    %205 = vector.broadcast %cst_43 : f32 to vector<8x128xf32>
    %206 = arith.addf %205, %204 : vector<8x128xf32>
    %207 = arith.divf %205, %206 : vector<8x128xf32>
    %208 = arith.mulf %199, %180 : vector<8x128xf32>
    %209 = arith.mulf %193, %201 : vector<8x128xf32>
    %210 = arith.addf %208, %209 : vector<8x128xf32>
    %211 = math.tanh %210 : vector<8x128xf32>
    %212 = arith.mulf %207, %211 : vector<8x128xf32>
    %c7_i32 = arith.constant 7 : i32
    %213 = arith.index_cast %c7_i32 : i32 to index
    %c0_44 = arith.constant 0 : index
    %c0_45 = arith.constant 0 : index
    %214 = vector.load %arg1[%213, %c0_44, %c0_45] : memref<8x8x512xf32, #tpu.memory_space<vmem>>, vector<1x8x512xf32>
    %215 = vector.shape_cast %214 : vector<1x8x512xf32> to vector<8x512xf32>
    %cst_46 = arith.constant dense<0.000000e+00> : vector<8x512xf32>
    %216 = tpu.matmul %212, %0, %cst_46 {dimension_numbers = #tpu.dot_dimension_numbers<[1], [0], [0], [1], [0, 0, 1, 1], [], []>} : vector<8x128xf32>, vector<128x512xf32>, vector<8x512xf32> -> vector<8x512xf32>
    %217 = arith.addf %215, %216 : vector<8x512xf32>
    %218 = vector.extract_strided_slice %217 {offsets = [0, 0], sizes = [8, 128], strides = [1, 1]} : vector<8x512xf32> to vector<8x128xf32>
    %219 = arith.negf %218 : vector<8x128xf32>
    %220 = math.exp %219 : vector<8x128xf32>
    %cst_47 = arith.constant 1.000000e+00 : f32
    %221 = vector.broadcast %cst_47 : f32 to vector<8x128xf32>
    %222 = arith.addf %221, %220 : vector<8x128xf32>
    %223 = arith.divf %221, %222 : vector<8x128xf32>
    %224 = vector.extract_strided_slice %217 {offsets = [0, 128], sizes = [8, 128], strides = [1, 1]} : vector<8x512xf32> to vector<8x128xf32>
    %225 = arith.negf %224 : vector<8x128xf32>
    %226 = math.exp %225 : vector<8x128xf32>
    %cst_48 = arith.constant 1.000000e+00 : f32
    %227 = vector.broadcast %cst_48 : f32 to vector<8x128xf32>
    %228 = arith.addf %227, %226 : vector<8x128xf32>
    %229 = arith.divf %227, %228 : vector<8x128xf32>
    %230 = vector.extract_strided_slice %217 {offsets = [0, 256], sizes = [8, 128], strides = [1, 1]} : vector<8x512xf32> to vector<8x128xf32>
    %231 = math.tanh %230 : vector<8x128xf32>
    %232 = vector.extract_strided_slice %217 {offsets = [0, 384], sizes = [8, 128], strides = [1, 1]} : vector<8x512xf32> to vector<8x128xf32>
    %233 = arith.negf %232 : vector<8x128xf32>
    %234 = math.exp %233 : vector<8x128xf32>
    %cst_49 = arith.constant 1.000000e+00 : f32
    %235 = vector.broadcast %cst_49 : f32 to vector<8x128xf32>
    %236 = arith.addf %235, %234 : vector<8x128xf32>
    %237 = arith.divf %235, %236 : vector<8x128xf32>
    %238 = arith.mulf %229, %210 : vector<8x128xf32>
    %239 = arith.mulf %223, %231 : vector<8x128xf32>
    %240 = arith.addf %238, %239 : vector<8x128xf32>
    %241 = math.tanh %240 : vector<8x128xf32>
    %242 = arith.mulf %237, %241 : vector<8x128xf32>
    %c8_i32 = arith.constant 8 : i32
    %c0_50 = arith.constant 0 : index
    %c0_51 = arith.constant 0 : index
    %243 = vector.load %arg3[%c0_50, %c0_51] : memref<8x128xf32, #tpu.memory_space<vmem>>, vector<8x128xf32>
    tpu.vector_store %arg3[%c0_50, %c0_51], %242 {strides = array<i32>} : memref<8x128xf32, #tpu.memory_space<vmem>>, vector<8x128xf32>,
    return
  }
  func.func @transform_0(%arg0: i32) -> (i32, i32, i32) {
    %c0_i32 = arith.constant 0 : i32
    %c0_i32_0 = arith.constant 0 : i32
    %c0_i32_1 = arith.constant 0 : i32
    return %c0_i32, %arg0, %c0_i32_0 : i32, i32, i32
  }
  func.func @transform_1(%arg0: i32) -> (i32, i32) {
    %c0_i32 = arith.constant 0 : i32
    %c0_i32_0 = arith.constant 0 : i32
    %c0_i32_1 = arith.constant 0 : i32
    return %c0_i32, %c0_i32_0 : i32, i32
  }
  func.func @transform_2(%arg0: i32) -> (i32, i32) {
    %c0_i32 = arith.constant 0 : i32
    %c0_i32_0 = arith.constant 0 : i32
    return %arg0, %c0_i32 : i32, i32
  }
}

</mosaic_0001>

<bundles_post_ra>
// kernel: tpu_custom_call.1
= control target key start
LH: loop header
LB: loop body
LE: loop exit
PB: predicated region body
PF: predicated region fallthrough
CT: control target
= control target key end

     0   :  { %7 = vsyncpa [#allocation3], 0  ;;  %s2681_s0 = inlined_call_operand.hbm [shape: f32[8,8,512], index: 0, kind: input, shape index: {}]   ;;  %s2682_s1 = inlined_call_operand.hbm [shape: f32[128,512], index: 1, kind: input, shape index: {}]   ;;  %s2683_s2 = inlined_call_operand.hbm [shape: f32[8,128], index: 2, kind: output, shape index: {}]  }
   0x1   :  { %8 = vsyncpa [#allocation6], 0 }
   0x2   :  { %9 = vsyncpa [#allocation4], 0  ;;  %s2262_s9 = smov [#allocation2]   ;;  %s2190_s13 = scalar_lea.hbm %s2681_s0, 4096 }
   0x3   :  { %s15_s10 = sshll.u32 %s2262_s9, 4  ;;  %p2191_p0 = scmp.ne.s32.totalorder %s2681_s0, %s2190_s13  ;;  %s16_s10 = int_to_ptr.vmem [resolvable:$true] %s15_s10 }
   0x4   :  { %p2194_p1 = scmp.lt.u32.totalorder %s2190_s13, %s2681_s0 }
   0x6   :  { %p2196_p2 = pnand %p2194_p1, %p2191_p0 }
   0x8   :  { %2199 = shalt.err (!%p2196_p2)
}
   0x9   :  { %s2200_s18 = scalar_lea.vmem %s16_s10, 4096  ;;  %p2205_p4 = scmp.lt.s32.totalorder %s16_s10, %s16_s10 }
   0xa   :  { %p2201_p3 = scmp.ne.s32.totalorder %s16_s10, %s2200_s18  ;;  %p2206_p5 = scmp.lt.s32.totalorder %s2200_s18, %s2200_s18 }
   0xc   :  { %p2207_p6 = por %p2206_p5, %p2205_p4 }
   0xe   :  { %p2208_p7 = pnand %p2207_p6, %p2201_p3 }
  0x10   :  { %2211 = shalt.err (!%p2208_p7)
}
  0x11   :  { %s2263_s19 = smov 512   ;;  %s2264_s20 = smov 32  }
  0x12   :  { %21 = dma.hbm_to_vmem [thread:$0]  %s2681_s0, 4096, %s16_s10, [#allocation3], %s2263_s19, %s2263_s19, %s2264_s20  }
  0x13   :  { %s2265_s23 = smov [#allocation5]   ;;  %s2212_s27 = scalar_lea.hbm %s2682_s1, 8192 }
  0x14   :  { %s27_s24 = sshll.u32 %s2265_s23, 4  ;;  %p2213_p8 = scmp.ne.s32.totalorder %s2682_s1, %s2212_s27  ;;  %s28_s24 = int_to_ptr.vmem [resolvable:$true] %s27_s24 }
  0x15   :  { %p2216_p9 = scmp.lt.u32.totalorder %s2212_s27, %s2682_s1 }
  0x17   :  { %p2218_p10 = pnand %p2216_p9, %p2213_p8 }
  0x19   :  { %2221 = shalt.err (!%p2218_p10)
}
  0x1a   :  { %s2222_s4 = scalar_lea.vmem %s28_s24, 8192  ;;  %p2227_p12 = scmp.lt.s32.totalorder %s28_s24, %s28_s24 }
  0x1b   :  { %p2223_p11 = scmp.ne.s32.totalorder %s28_s24, %s2222_s4  ;;  %p2228_p13 = scmp.lt.s32.totalorder %s2222_s4, %s2222_s4 }
  0x1d   :  { %p2229_p0 = por %p2228_p13, %p2227_p12 }
  0x1f   :  { %p2230_p1 = pnand %p2229_p0, %p2223_p11 }
  0x21   :  { %2233 = shalt.err (!%p2230_p1)
}
  0x22   :  { %33 = dma.hbm_to_vmem [thread:$0]  %s2682_s1, 8192, %s28_s24, [#allocation6], %s2263_s19, %s2263_s19, %s2264_s20  }
  0x23   :  { %2256 = dma.done.wait [#allocation3], 4096  }
  0x24   :  { %2257 = vsyncadd [#allocation3], 4294963200 }
  0x25   :  { %2258 = dma.done.wait [#allocation6], 8192  }
  0x26   :  { %2259 = vsyncadd [#allocation6], 4294959104  ;;  %v2266_v0 = vmov 0.0   ;;  %v41_v1 = vld [vmem:[#allocation5 + $0x8] sm:$0xff]  ;;  %v40_v3 = vld [vmem:[#allocation5] sm:$0xff]  ;;  %s2267_s1 = smov [#allocation7]  }
  0x27   :  { %172 = vmatprep.mubr.f32.mxu0 %v2266_v0  ;;  %243 = vmatprep.mubr.f32.mxu1 %v2266_v0  ;;  %v45_v2 = vld [vmem:[#allocation5 + $0x28] sm:$0xff]  ;;  %v44_v5 = vld [vmem:[#allocation5 + $0x20] sm:$0xff]  ;;  %v43_v19 = vld [vmem:[#allocation5 + $0x18] sm:$0xff]  ;;  %s1510_s6 = sshll.u32 %s2267_s1, 4  ;;  %s1511_s6 = int_to_ptr.vmem [resolvable:$true] %s1510_s6 }
  0x28   :  { %v2309_v4 = vpack.c.bf16 %v45_v2, %v41_v1  ;;  %v49_v6 = vld [vmem:[#allocation5 + $0x48] sm:$0xff]  ;;  %v2311_v8 = vpack.c.bf16 %v44_v5, %v40_v3  ;;  %v48_v10 = vld [vmem:[#allocation5 + $0x40] sm:$0xff]  ;;  %v47_v20 = vld [vmem:[#allocation5 + $0x38] sm:$0xff]  ;;  %s2234_s7 = scalar_lea.vmem %s1511_s6, 128  ;;  %p2239_p3 = scmp.lt.s32.totalorder %s1511_s6, %s1511_s6 }
  0x29   :  { %v53_v7 = vld [vmem:[#allocation5 + $0x68] sm:$0xff]  ;;  %v52_v11 = vld [vmem:[#allocation5 + $0x60] sm:$0xff]  ;;  %v2322_v22 = vpack.c.bf16 %v47_v20, %v43_v19  ;;  %v42_v23 = vld [vmem:[#allocation5 + $0x10] sm:$0xff]  ;;  %p2235_p2 = scmp.ne.s32.totalorder %s1511_s6, %s2234_s7  ;;  %p2240_p4 = scmp.lt.s32.totalorder %s2234_s7, %s2234_s7 }
  0x2a   :  { %v2313_v9 = vpack.c.bf16 %v53_v7, %v49_v6  ;;  %v57_v12 = vld [vmem:[#allocation5 + $0x88] sm:$0xff]  ;;  %1545 = vmatprep.subr.bf16.mxu0 %v2309_v4  ;;  %v2317_v14 = vpack.c.bf16 %v52_v11, %v48_v10  ;;  %v56_v15 = vld [vmem:[#allocation5 + $0x80] sm:$0xff]  ;;  %v46_v24 = vld [vmem:[#allocation5 + $0x30] sm:$0xff] }
  0x2b   :  { %v61_v13 = vld [vmem:[#allocation5 + $0xa8] sm:$0xff]  ;;  %1547 = vmatpush1.bf16.msra.mxu0 %v2311_v8  ;;  %v60_v16 = vld [vmem:[#allocation5 + $0xa0] sm:$0xff]  ;;  %v2324_v25 = vpack.c.bf16 %v46_v24, %v42_v23  ;;  %1577 = vmatprep.subr.bf16.mxu1 %v2322_v22  ;;  %v51_v27 = vld [vmem:[#allocation5 + $0x58] sm:$0xff]  ;;  %p2241_p5 = por %p2240_p4, %p2239_p3 }
  0x2c   :  { %1549 = vmatprep.subr.bf16.mxu0 %v2313_v9  ;;  %v2320_v17 = vpack.c.bf16 %v61_v13, %v57_v12  ;;  %v65_v18 = vld [vmem:[#allocation5 + $0xc8] sm:$0xff]  ;;  %v2327_v26 = vpack.c.bf16 %v60_v16, %v56_v15  ;;  %v55_v28 = vld [vmem:[#allocation5 + $0x78] sm:$0xff]  ;;  %v50_v29 = vld [vmem:[#allocation5 + $0x50] sm:$0xff] }
  0x2d   :  { %v69_v21 = vld [vmem:[#allocation5 + $0xe8] sm:$0xff]  ;;  %v64_v31 = vld [vmem:[#allocation5 + $0xc0] sm:$0xff]  ;;  %1579 = vmatpush1.bf16.msra.mxu1 %v2324_v25  ;;  %v2334_v33 = vpack.c.bf16 %v55_v28, %v51_v27  ;;  %v54_v34 = vld [vmem:[#allocation5 + $0x70] sm:$0xff]  ;;  %p2242_p6 = pnand %p2241_p5, %p2235_p2 }
  0x2e   :  { %v2331_v30 = vpack.c.bf16 %v69_v21, %v65_v18  ;;  %v68_v32 = vld [vmem:[#allocation5 + $0xe0] sm:$0xff]  ;;  %v73_v35 = vld [vmem:[#allocation5 + $0x108] sm:$0xff]  ;;  %v2336_v37 = vpack.c.bf16 %v54_v34, %v50_v29  ;;  %v59_v38 = vld [vmem:[#allocation5 + $0x98] sm:$0xff] }
  0x2f   :  { %1551 = vmatpush1.bf16.msra.mxu0 %v2317_v14  ;;  %v77_v36 = vld [vmem:[#allocation5 + $0x128] sm:$0xff]  ;;  %1581 = vmatprep.subr.bf16.mxu1 %v2334_v33  ;;  %v63_v39 = vld [vmem:[#allocation5 + $0xb8] sm:$0xff]  ;;  %v58_v40 = vld [vmem:[#allocation5 + $0x90] sm:$0xff]  ;;  %v2340_v42 = vpack.c.bf16 %v68_v32, %v64_v31 }
  0x30   :  { %1553 = vmatprep.subr.bf16.mxu0 %v2320_v17  ;;  %v62_v41 = vld [vmem:[#allocation5 + $0xb0] sm:$0xff]  ;;  %v72_v43 = vld [vmem:[#allocation5 + $0x100] sm:$0xff]  ;;  %v2342_v45 = vpack.c.bf16 %v63_v39, %v59_v38  ;;  %v2345_v46 = vpack.c.bf16 %v77_v36, %v73_v35  ;;  %v81_v47 = vld [vmem:[#allocation5 + $0x148] sm:$0xff] }
  0x31   :  { %v76_v44 = vld [vmem:[#allocation5 + $0x120] sm:$0xff]  ;;  %1583 = vmatpush1.bf16.msra.mxu1 %v2336_v37  ;;  %v2348_v48 = vpack.c.bf16 %v62_v41, %v58_v40  ;;  %v67_v49 = vld [vmem:[#allocation5 + $0xd8] sm:$0xff]  ;;  %v85_v51 = vld [vmem:[#allocation5 + $0x168] sm:$0xff] }
  0x32   :  { %v71_v50 = vld [vmem:[#allocation5 + $0xf8] sm:$0xff]  ;;  %1585 = vmatprep.subr.bf16.mxu1 %v2342_v45  ;;  %v66_v53 = vld [vmem:[#allocation5 + $0xd0] sm:$0xff]  ;;  %v2354_v55 = vpack.c.bf16 %v76_v44, %v72_v43  ;;  %v2357_v58 = vpack.c.bf16 %v85_v51, %v81_v47  ;;  %v80_v59 = vld [vmem:[#allocation5 + $0x140] sm:$0xff] }
  0x33   :  { %1555 = vmatpush1.bf16.msra.mxu0 %v2327_v26  ;;  %v2351_v52 = vpack.c.bf16 %v71_v50, %v67_v49  ;;  %v70_v54 = vld [vmem:[#allocation5 + $0xf0] sm:$0xff]  ;;  %v75_v56 = vld [vmem:[#allocation5 + $0x118] sm:$0xff]  ;;  %v84_v60 = vld [vmem:[#allocation5 + $0x160] sm:$0xff] }
  0x34   :  { %1557 = vmatprep.subr.bf16.mxu0 %v2331_v30  ;;  %v79_v57 = vld [vmem:[#allocation5 + $0x138] sm:$0xff]  ;;  %v89_v61 = vld [vmem:[#allocation5 + $0x188] sm:$0xff]  ;;  %v2360_v62 = vpack.c.bf16 %v70_v54, %v66_v53  ;;  %v74_v2 = vld [vmem:[#allocation5 + $0x110] sm:$0xff]  ;;  %v2366_v7 = vpack.c.bf16 %v84_v60, %v80_v59 }
  0x35   :  { %1587 = vmatpush1.bf16.msra.mxu1 %v2348_v48  ;;  %v93_v63 = vld [vmem:[#allocation5 + $0x1a8] sm:$0xff]  ;;  %v2363_v1 = vpack.c.bf16 %v79_v57, %v75_v56  ;;  %v78_v3 = vld [vmem:[#allocation5 + $0x130] sm:$0xff]  ;;  %v83_v5 = vld [vmem:[#allocation5 + $0x158] sm:$0xff] }
  0x36   :  { %1589 = vmatprep.subr.bf16.mxu1 %v2351_v52  ;;  %v87_v6 = vld [vmem:[#allocation5 + $0x178] sm:$0xff]  ;;  %v2369_v10 = vpack.c.bf16 %v93_v63, %v89_v61  ;;  %v88_v11 = vld [vmem:[#allocation5 + $0x180] sm:$0xff]  ;;  %v97_v13 = vld [vmem:[#allocation5 + $0x1c8] sm:$0xff]  ;;  %v2372_v15 = vpack.c.bf16 %v78_v3, %v74_v2 }
  0x37   :  { %1559 = vmatpush1.bf16.msra.mxu0 %v2340_v42  ;;  %v92_v12 = vld [vmem:[#allocation5 + $0x1a0] sm:$0xff]  ;;  %v101_v16 = vld [vmem:[#allocation5 + $0x1e8] sm:$0xff]  ;;  %v2375_v18 = vpack.c.bf16 %v87_v6, %v83_v5  ;;  %v82_v19 = vld [vmem:[#allocation5 + $0x150] sm:$0xff] }
  0x38   :  { %1561 = vmatprep.subr.bf16.mxu0 %v2345_v46  ;;  %v86_v20 = vld [vmem:[#allocation5 + $0x170] sm:$0xff]  ;;  %v91_v21 = vld [vmem:[#allocation5 + $0x198] sm:$0xff]  ;;  %v2378_v24 = vpack.c.bf16 %v92_v12, %v88_v11  ;;  %v2381_v27 = vpack.c.bf16 %v101_v16, %v97_v13  ;;  %v96_v28 = vld [vmem:[#allocation5 + $0x1c0] sm:$0xff] }
  0x39   :  { %1591 = vmatpush1.bf16.msra.mxu1 %v2360_v62  ;;  %v95_v23 = vld [vmem:[#allocation5 + $0x1b8] sm:$0xff]  ;;  %v100_v29 = vld [vmem:[#allocation5 + $0x1e0] sm:$0xff]  ;;  %v2384_v31 = vpack.c.bf16 %v86_v20, %v82_v19  ;;  %v90_v34 = vld [vmem:[#allocation5 + $0x190] sm:$0xff] }
  0x3a   :  { %1593 = vmatprep.subr.bf16.mxu1 %v2363_v1  ;;  %v2387_v32 = vpack.c.bf16 %v95_v23, %v91_v21  ;;  %v94_v35 = vld [vmem:[#allocation5 + $0x1b0] sm:$0xff]  ;;  %v99_v36 = vld [vmem:[#allocation5 + $0x1d8] sm:$0xff]  ;;  %v2390_v39 = vpack.c.bf16 %v100_v29, %v96_v28  ;;  %v104_v49 = vld [vmem:[#allocation2] sm:$0xff] }
  0x3b   :  { %1563 = vmatpush1.bf16.msra.mxu0 %v2354_v55  ;;  %v103_v38 = vld [vmem:[#allocation5 + $0x1f8] sm:$0xff]  ;;  %v2394_v40 = vpack.c.bf16 %v94_v35, %v90_v34  ;;  %v98_v43 = vld [vmem:[#allocation5 + $0x1d0] sm:$0xff]  ;;  %v105_v50 = vld [vmem:[#allocation2 + $0x8] sm:$0xff] }
  0x3c   :  { %1565 = vmatprep.subr.bf16.mxu0 %v2357_v58  ;;  %v2397_v41 = vpack.c.bf16 %v103_v38, %v99_v36  ;;  %v102_v44 = vld [vmem:[#allocation5 + $0x1f0] sm:$0xff]  ;;  %v107_v60 = vld [vmem:[#allocation2 + $0x18] sm:$0xff] }
  0x3d   :  { %1595 = vmatpush1.bf16.msra.mxu1 %v2372_v15  ;;  %v2401_v47 = vpack.c.bf16 %v102_v44, %v98_v43  ;;  %v106_v3 = vld [vmem:[#allocation2 + $0x10] sm:$0xff]  ;;  %v279_v44 = vld [vmem:[#allocation2 + $0x20] sm:$0xff] }
  0x3e   :  { %1597 = vmatprep.subr.bf16.mxu1 %v2375_v18 }
  0x3f   :  { %1567 = vmatpush1.bf16.msra.mxu0 %v2366_v7 }
  0x40   :  { %1569 = vmatprep.subr.bf16.mxu0 %v2369_v10 }
  0x41   :  { %1599 = vmatpush1.bf16.msra.mxu1 %v2384_v31 }
  0x42   :  { %1601 = vmatprep.subr.bf16.mxu1 %v2387_v32 }
  0x43   :  { %1571 = vmatpush1.bf16.msra.mxu0 %v2378_v24 }
  0x44   :  { %1573 = vmatprep.subr.bf16.mxu0 %v2381_v27 }
  0x45   :  { %1603 = vmatpush1.bf16.msra.mxu1 %v2394_v40 }
  0x46   :  { %1605 = vmatprep.subr.bf16.mxu1 %v2397_v41 }
  0x47   :  { %1575 = vmatpush1.bf16.msra.mxu0 %v2390_v39 }
  0x48   :  { %1609 = vmatprep.subr.bf16.mxu0 %v2309_v4 }
  0x49   :  { %1607 = vmatpush1.bf16.msra.mxu1 %v2401_v47 }
  0x4a   :  { %173 = vmatmul.mubr.f32.vlgmr.msra.gmra.mrb[0].mxu0 %v2266_v0  ;;  %1641 = vmatprep.subr.bf16.mxu1 %v2322_v22 }
  0x4b   :  { %1611 = vmatpush1.bf16.msra.mxu0 %v2311_v8  ;;  %347 = vmatprep.mubr.f32.mxu0 %v2266_v0 }
  0x4c   :  { %1613 = vmatprep.subr.bf16.mxu0 %v2313_v9  ;;  %244 = vmatmul.mubr.f32.vlgmr.msra.gmra.mrb[0].mxu1 %v2266_v0 }
  0x4d   :  { %1643 = vmatpush1.bf16.msra.mxu1 %v2324_v25  ;;  %418 = vmatprep.mubr.f32.mxu1 %v2266_v0 }
  0x4e   :  { %1645 = vmatprep.subr.bf16.mxu1 %v2334_v33 }
  0x4f   :  { %1615 = vmatpush1.bf16.msra.mxu0 %v2317_v14 }
  0x50   :  { %1617 = vmatprep.subr.bf16.mxu0 %v2320_v17 }
  0x51   :  { %1647 = vmatpush1.bf16.msra.mxu1 %v2336_v37 }
  0x52   :  { %1649 = vmatprep.subr.bf16.mxu1 %v2342_v45 }
  0x53   :  { %1619 = vmatpush1.bf16.msra.mxu0 %v2327_v26 }
  0x54   :  { %1621 = vmatprep.subr.bf16.mxu0 %v2331_v30 }
  0x55   :  { %1651 = vmatpush1.bf16.msra.mxu1 %v2348_v48 }
  0x56   :  { %1653 = vmatprep.subr.bf16.mxu1 %v2351_v52 }
  0x57   :  { %1623 = vmatpush1.bf16.msra.mxu0 %v2340_v42 }
  0x58   :  { %1625 = vmatprep.subr.bf16.mxu0 %v2345_v46 }
  0x59   :  { %1655 = vmatpush1.bf16.msra.mxu1 %v2360_v62 }
  0x5a   :  { %1657 = vmatprep.subr.bf16.mxu1 %v2363_v1 }
  0x5b   :  { %1627 = vmatpush1.bf16.msra.mxu0 %v2354_v55 }
  0x5c   :  { %1629 = vmatprep.subr.bf16.mxu0 %v2357_v58 }
  0x5d   :  { %1659 = vmatpush1.bf16.msra.mxu1 %v2372_v15 }
  0x5e   :  { %1661 = vmatprep.subr.bf16.mxu1 %v2375_v18 }
  0x5f   :  { %1631 = vmatpush1.bf16.msra.mxu0 %v2366_v7 }
  0x60   :  { %1633 = vmatprep.subr.bf16.mxu0 %v2369_v10 }
  0x61   :  { %1663 = vmatpush1.bf16.msra.mxu1 %v2384_v31 }
  0x62   :  { %1665 = vmatprep.subr.bf16.mxu1 %v2387_v32 }
  0x63   :  { %1635 = vmatpush1.bf16.msra.mxu0 %v2378_v24 }
  0x64   :  { %1637 = vmatprep.subr.bf16.mxu0 %v2381_v27 }
  0x65   :  { %1667 = vmatpush1.bf16.msra.mxu1 %v2394_v40 }
  0x66   :  { %1669 = vmatprep.subr.bf16.mxu1 %v2397_v41 }
  0x67   :  { %1639 = vmatpush1.bf16.msra.mxu0 %v2390_v39 }
  0x68   :  { %1673 = vmatprep.subr.bf16.mxu0 %v2309_v4 }
  0x69   :  { %1671 = vmatpush1.bf16.msra.mxu1 %v2401_v47 }
  0x6a   :  { %1705 = vmatprep.subr.bf16.mxu1 %v2322_v22 }
 0x11d   :  { %v174_v51 = vpop.f32.mrb[0].mxu0 }
 0x11e   :  { %v250_v53 = vadd.f32 %v174_v51, %v104_v49  ;;  %v176_v54 = vpop.f32.mrb[1].mxu0  ;;  %v280_v49 = vld [vmem:[#allocation2 + $0x28] sm:$0xff] }
 0x11f   :  { %v251_v56 = vadd.f32 %v176_v54, %v105_v50  ;;  %v245_v61 = vpop.f32.mrb[0].mxu1 }
 0x120   :  { %v1520_v57 = vmul.f32 -1.442695, %v250_v53  ;;  %v247_v63 = vpop.f32.mrb[1].mxu1  ;;  %v252_v6 = vadd.f32 %v245_v61, %v106_v3  ;;  %v282_v61 = vld [vmem:[#allocation2 + $0x38] sm:$0xff] }
 0x121   :  { %v1521_v59 = vmul.f32 -1.442695, %v251_v56  ;;  %v253_v2 = vadd.f32 %v247_v63, %v107_v60 }
 0x122   :  { %2062 = vpow2.f32 %v1520_v57 }
 0x123   :  { %2064 = vpow2.f32 %v1521_v59  ;;  %v1522_v5 = vmul.f32 -1.442695, %v253_v2  ;;  %v281_v2 = vld [vmem:[#allocation2 + $0x30] sm:$0xff] }
 0x125   :  { %2066 = vpow2.f32 %v1522_v5 }
 0x126   :  { %2068 = vtanh.f32 %v252_v6 }
 0x12c   :  { %v2063_v11 = vpop.eup %2062 }
 0x12d   :  { %v2065_v12 = vpop.eup %2064  ;;  %v257_v13 = vadd.f32 1.0, %v2063_v11 }
 0x12e   :  { %v263_v16 = vadd.f32 1.0, %v2065_v12 }
 0x12f   :  { %2070 = vrcp.f32 %v257_v13  ;;  %v2067_v19 = vpop.eup %2066 }
 0x130   :  { %2072 = vrcp.f32 %v263_v16  ;;  %v2069_v20 = vpop.eup %2068  ;;  %v270_v23 = vadd.f32 1.0, %v2067_v19 }
 0x132   :  { %2074 = vrcp.f32 %v270_v23 }
 0x139   :  { %v2071_v21 = vpop.eup %2070 }
 0x13a   :  { %v2073_v28 = vpop.eup %2072  ;;  %v274_v29 = vmul.f32 %v2071_v21, %v2069_v20 }
 0x13b   :  { %v273_v34 = vmul.f32 0.0, %v2073_v28 }
 0x13c   :  { %v2075_v36 = vpop.eup %2074 }
 0x13d   :  { %v2443_v35 = vadd.f32 %v274_v29, %v273_v34 }
 0x13f   :  { %2076 = vtanh.f32 %v2443_v35 }
 0x149   :  { %v2077_v38 = vpop.eup %2076 }
 0x14a   :  { %v277_v43 = vmul.f32 %v2077_v38, %v2075_v36 }
 0x14c   :  { %348 = vmatmul.mubr.f32.vlgmr.msra.gmra.mrb[2].mxu0 %v277_v43  ;;  %419 = vmatmul.mubr.f32.vlgmr.msra.gmra.mrb[2].mxu1 %v277_v43 }
 0x14d   :  { %1675 = vmatpush1.bf16.msra.mxu0 %v2311_v8  ;;  %1707 = vmatpush1.bf16.msra.mxu1 %v2324_v25 }
 0x14e   :  { %1677 = vmatprep.subr.bf16.mxu0 %v2313_v9  ;;  %1709 = vmatprep.subr.bf16.mxu1 %v2334_v33 }
 0x14f   :  { %522 = vmatprep.mubr.f32.mxu0 %v2266_v0  ;;  %593 = vmatprep.mubr.f32.mxu1 %v2266_v0 }
 0x151   :  { %1679 = vmatpush1.bf16.msra.mxu0 %v2317_v14  ;;  %1711 = vmatpush1.bf16.msra.mxu1 %v2336_v37 }
 0x152   :  { %1681 = vmatprep.subr.bf16.mxu0 %v2320_v17  ;;  %1713 = vmatprep.subr.bf16.mxu1 %v2342_v45 }
 0x155   :  { %1683 = vmatpush1.bf16.msra.mxu0 %v2327_v26  ;;  %1715 = vmatpush1.bf16.msra.mxu1 %v2348_v48 }
 0x156   :  { %1685 = vmatprep.subr.bf16.mxu0 %v2331_v30  ;;  %1717 = vmatprep.subr.bf16.mxu1 %v2351_v52 }
 0x159   :  { %1687 = vmatpush1.bf16.msra.mxu0 %v2340_v42  ;;  %1719 = vmatpush1.bf16.msra.mxu1 %v2360_v62 }
 0x15a   :  { %1689 = vmatprep.subr.bf16.mxu0 %v2345_v46  ;;  %1721 = vmatprep.subr.bf16.mxu1 %v2363_v1 }
 0x15d   :  { %1691 = vmatpush1.bf16.msra.mxu0 %v2354_v55  ;;  %1723 = vmatpush1.bf16.msra.mxu1 %v2372_v15 }
 0x15e   :  { %1693 = vmatprep.subr.bf16.mxu0 %v2357_v58  ;;  %1725 = vmatprep.subr.bf16.mxu1 %v2375_v18 }
 0x161   :  { %1695 = vmatpush1.bf16.msra.mxu0 %v2366_v7  ;;  %1727 = vmatpush1.bf16.msra.mxu1 %v2384_v31 }
 0x162   :  { %1697 = vmatprep.subr.bf16.mxu0 %v2369_v10  ;;  %1729 = vmatprep.subr.bf16.mxu1 %v2387_v32 }
 0x165   :  { %1699 = vmatpush1.bf16.msra.mxu0 %v2378_v24  ;;  %1731 = vmatpush1.bf16.msra.mxu1 %v2394_v40 }
 0x166   :  { %1701 = vmatprep.subr.bf16.mxu0 %v2381_v27  ;;  %1733 = vmatprep.subr.bf16.mxu1 %v2397_v41 }
 0x169   :  { %1703 = vmatpush1.bf16.msra.mxu0 %v2390_v39  ;;  %1735 = vmatpush1.bf16.msra.mxu1 %v2401_v47 }
 0x16a   :  { %1737 = vmatprep.subr.bf16.mxu0 %v2309_v4  ;;  %1769 = vmatprep.subr.bf16.mxu1 %v2322_v22 }
 0x21f   :  { %v349_v50 = vpop.f32.mrb[2].mxu0  ;;  %v420_v51 = vpop.f32.mrb[2].mxu1 }
 0x220   :  { %v425_v53 = vadd.f32 %v349_v50, %v279_v44  ;;  %v351_v54 = vpop.f32.mrb[3].mxu0  ;;  %v422_v56 = vpop.f32.mrb[3].mxu1  ;;  %v427_v5 = vadd.f32 %v420_v51, %v281_v2  ;;  %v455_v44 = vld [vmem:[#allocation2 + $0x48] sm:$0xff] }
 0x221   :  { %v426_v57 = vadd.f32 %v351_v54, %v280_v49  ;;  %v428_v63 = vadd.f32 %v422_v56, %v282_v61 }
 0x222   :  { %v1523_v59 = vmul.f32 -1.442695, %v425_v53 }
 0x223   :  { %v1524_v60 = vmul.f32 -1.442695, %v426_v57  ;;  %v1525_v3 = vmul.f32 -1.442695, %v428_v63  ;;  %v456_v63 = vld [vmem:[#allocation2 + $0x50] sm:$0xff] }
 0x224   :  { %2078 = vpow2.f32 %v1523_v59 }
 0x225   :  { %2080 = vpow2.f32 %v1524_v60  ;;  %v457_v60 = vld [vmem:[#allocation2 + $0x58] sm:$0xff] }
 0x226   :  { %2082 = vpow2.f32 %v1525_v3 }
 0x227   :  { %2084 = vtanh.f32 %v427_v5 }
 0x22e   :  { %v2079_v6 = vpop.eup %2078 }
 0x22f   :  { %v2081_v11 = vpop.eup %2080  ;;  %v432_v12 = vadd.f32 1.0, %v2079_v6 }
 0x230   :  { %v438_v13 = vadd.f32 1.0, %v2081_v11  ;;  %v2083_v16 = vpop.eup %2082 }
 0x231   :  { %2086 = vrcp.f32 %v432_v12  ;;  %v2085_v19 = vpop.eup %2084  ;;  %v445_v28 = vadd.f32 1.0, %v2083_v16 }
 0x232   :  { %2088 = vrcp.f32 %v438_v13 }
 0x233   :  { %2090 = vrcp.f32 %v445_v28 }
 0x23b   :  { %v2087_v20 = vpop.eup %2086 }
 0x23c   :  { %v2089_v21 = vpop.eup %2088  ;;  %v449_v23 = vmul.f32 %v2087_v20, %v2085_v19 }
 0x23d   :  { %v448_v29 = vmul.f32 %v2089_v21, %v2443_v35  ;;  %v2091_v36 = vpop.eup %2090  ;;  %v454_v35 = vld [vmem:[#allocation2 + $0x40] sm:$0xff] }
 0x23f   :  { %v2481_v34 = vadd.f32 %v449_v23, %v448_v29 }
 0x241   :  { %2092 = vtanh.f32 %v2481_v34 }
 0x24b   :  { %v2093_v38 = vpop.eup %2092 }
 0x24c   :  { %v452_v43 = vmul.f32 %v2093_v38, %v2091_v36 }
 0x24e   :  { %523 = vmatmul.mubr.f32.vlgmr.msra.gmra.mrb[4].mxu0 %v452_v43  ;;  %594 = vmatmul.mubr.f32.vlgmr.msra.gmra.mrb[4].mxu1 %v452_v43 }
 0x24f   :  { %1739 = vmatpush1.bf16.msra.mxu0 %v2311_v8  ;;  %1771 = vmatpush1.bf16.msra.mxu1 %v2324_v25 }
 0x250   :  { %1741 = vmatprep.subr.bf16.mxu0 %v2313_v9  ;;  %1773 = vmatprep.subr.bf16.mxu1 %v2334_v33 }
 0x251   :  { %697 = vmatprep.mubr.f32.mxu0 %v2266_v0  ;;  %768 = vmatprep.mubr.f32.mxu1 %v2266_v0 }
 0x253   :  { %1743 = vmatpush1.bf16.msra.mxu0 %v2317_v14  ;;  %1775 = vmatpush1.bf16.msra.mxu1 %v2336_v37 }
 0x254   :  { %1745 = vmatprep.subr.bf16.mxu0 %v2320_v17  ;;  %1777 = vmatprep.subr.bf16.mxu1 %v2342_v45 }
 0x257   :  { %1747 = vmatpush1.bf16.msra.mxu0 %v2327_v26  ;;  %1779 = vmatpush1.bf16.msra.mxu1 %v2348_v48 }
 0x258   :  { %1749 = vmatprep.subr.bf16.mxu0 %v2331_v30  ;;  %1781 = vmatprep.subr.bf16.mxu1 %v2351_v52 }
 0x25b   :  { %1751 = vmatpush1.bf16.msra.mxu0 %v2340_v42  ;;  %1783 = vmatpush1.bf16.msra.mxu1 %v2360_v62 }
 0x25c   :  { %1753 = vmatprep.subr.bf16.mxu0 %v2345_v46  ;;  %1785 = vmatprep.subr.bf16.mxu1 %v2363_v1 }
 0x25f   :  { %1755 = vmatpush1.bf16.msra.mxu0 %v2354_v55  ;;  %1787 = vmatpush1.bf16.msra.mxu1 %v2372_v15 }
 0x260   :  { %1757 = vmatprep.subr.bf16.mxu0 %v2357_v58  ;;  %1789 = vmatprep.subr.bf16.mxu1 %v2375_v18 }
 0x263   :  { %1759 = vmatpush1.bf16.msra.mxu0 %v2366_v7  ;;  %1791 = vmatpush1.bf16.msra.mxu1 %v2384_v31 }
 0x264   :  { %1761 = vmatprep.subr.bf16.mxu0 %v2369_v10  ;;  %1793 = vmatprep.subr.bf16.mxu1 %v2387_v32 }
 0x267   :  { %1763 = vmatpush1.bf16.msra.mxu0 %v2378_v24  ;;  %1795 = vmatpush1.bf16.msra.mxu1 %v2394_v40 }
 0x268   :  { %1765 = vmatprep.subr.bf16.mxu0 %v2381_v27  ;;  %1797 = vmatprep.subr.bf16.mxu1 %v2397_v41 }
 0x26b   :  { %1767 = vmatpush1.bf16.msra.mxu0 %v2390_v39  ;;  %1799 = vmatpush1.bf16.msra.mxu1 %v2401_v47 }
 0x26c   :  { %1801 = vmatprep.subr.bf16.mxu0 %v2309_v4  ;;  %1833 = vmatprep.subr.bf16.mxu1 %v2322_v22 }
 0x321   :  { %v524_v49 = vpop.f32.mrb[4].mxu0  ;;  %v595_v50 = vpop.f32.mrb[4].mxu1 }
 0x322   :  { %v600_v51 = vadd.f32 %v524_v49, %v454_v35  ;;  %v526_v53 = vpop.f32.mrb[5].mxu0  ;;  %v597_v54 = vpop.f32.mrb[5].mxu1  ;;  %v602_v3 = vadd.f32 %v595_v50, %v456_v63  ;;  %v630_v35 = vld [vmem:[#allocation2 + $0x68] sm:$0xff] }
 0x323   :  { %v601_v56 = vadd.f32 %v526_v53, %v455_v44  ;;  %v603_v61 = vadd.f32 %v597_v54, %v457_v60 }
 0x324   :  { %v1526_v57 = vmul.f32 -1.442695, %v600_v51 }
 0x325   :  { %v1527_v59 = vmul.f32 -1.442695, %v601_v56  ;;  %v1528_v2 = vmul.f32 -1.442695, %v603_v61  ;;  %v631_v61 = vld [vmem:[#allocation2 + $0x70] sm:$0xff] }
 0x326   :  { %2094 = vpow2.f32 %v1526_v57 }
 0x327   :  { %2096 = vpow2.f32 %v1527_v59  ;;  %v632_v59 = vld [vmem:[#allocation2 + $0x78] sm:$0xff] }
 0x328   :  { %2098 = vpow2.f32 %v1528_v2 }
 0x329   :  { %2100 = vtanh.f32 %v602_v3 }
 0x330   :  { %v2095_v5 = vpop.eup %2094 }
 0x331   :  { %v2097_v6 = vpop.eup %2096  ;;  %v607_v11 = vadd.f32 1.0, %v2095_v5 }
 0x332   :  { %v613_v12 = vadd.f32 1.0, %v2097_v6  ;;  %v2099_v13 = vpop.eup %2098 }
 0x333   :  { %2102 = vrcp.f32 %v607_v11  ;;  %v2101_v16 = vpop.eup %2100  ;;  %v620_v23 = vadd.f32 1.0, %v2099_v13 }
 0x334   :  { %2104 = vrcp.f32 %v613_v12 }
 0x335   :  { %2106 = vrcp.f32 %v620_v23 }
 0x33d   :  { %v2103_v19 = vpop.eup %2102 }
 0x33e   :  { %v2105_v20 = vpop.eup %2104  ;;  %v624_v21 = vmul.f32 %v2103_v19, %v2101_v16 }
 0x33f   :  { %v623_v28 = vmul.f32 %v2105_v20, %v2481_v34  ;;  %v2107_v36 = vpop.eup %2106  ;;  %v629_v34 = vld [vmem:[#allocation2 + $0x60] sm:$0xff] }
 0x341   :  { %v2519_v29 = vadd.f32 %v624_v21, %v623_v28 }
 0x343   :  { %2108 = vtanh.f32 %v2519_v29 }
 0x34d   :  { %v2109_v38 = vpop.eup %2108 }
 0x34e   :  { %v627_v43 = vmul.f32 %v2109_v38, %v2107_v36 }
 0x350   :  { %698 = vmatmul.mubr.f32.vlgmr.msra.gmra.mrb[6].mxu0 %v627_v43  ;;  %769 = vmatmul.mubr.f32.vlgmr.msra.gmra.mrb[6].mxu1 %v627_v43 }
 0x351   :  { %1803 = vmatpush1.bf16.msra.mxu0 %v2311_v8  ;;  %1835 = vmatpush1.bf16.msra.mxu1 %v2324_v25 }
 0x352   :  { %1805 = vmatprep.subr.bf16.mxu0 %v2313_v9  ;;  %1837 = vmatprep.subr.bf16.mxu1 %v2334_v33 }
 0x353   :  { %872 = vmatprep.mubr.f32.mxu0 %v2266_v0  ;;  %943 = vmatprep.mubr.f32.mxu1 %v2266_v0 }
 0x355   :  { %1807 = vmatpush1.bf16.msra.mxu0 %v2317_v14  ;;  %1839 = vmatpush1.bf16.msra.mxu1 %v2336_v37 }
 0x356   :  { %1809 = vmatprep.subr.bf16.mxu0 %v2320_v17  ;;  %1841 = vmatprep.subr.bf16.mxu1 %v2342_v45 }
 0x359   :  { %1811 = vmatpush1.bf16.msra.mxu0 %v2327_v26  ;;  %1843 = vmatpush1.bf16.msra.mxu1 %v2348_v48 }
 0x35a   :  { %1813 = vmatprep.subr.bf16.mxu0 %v2331_v30  ;;  %1845 = vmatprep.subr.bf16.mxu1 %v2351_v52 }
 0x35d   :  { %1815 = vmatpush1.bf16.msra.mxu0 %v2340_v42  ;;  %1847 = vmatpush1.bf16.msra.mxu1 %v2360_v62 }
 0x35e   :  { %1817 = vmatprep.subr.bf16.mxu0 %v2345_v46  ;;  %1849 = vmatprep.subr.bf16.mxu1 %v2363_v1 }
 0x361   :  { %1819 = vmatpush1.bf16.msra.mxu0 %v2354_v55  ;;  %1851 = vmatpush1.bf16.msra.mxu1 %v2372_v15 }
 0x362   :  { %1821 = vmatprep.subr.bf16.mxu0 %v2357_v58  ;;  %1853 = vmatprep.subr.bf16.mxu1 %v2375_v18 }
 0x365   :  { %1823 = vmatpush1.bf16.msra.mxu0 %v2366_v7  ;;  %1855 = vmatpush1.bf16.msra.mxu1 %v2384_v31 }
 0x366   :  { %1825 = vmatprep.subr.bf16.mxu0 %v2369_v10  ;;  %1857 = vmatprep.subr.bf16.mxu1 %v2387_v32 }
 0x369   :  { %1827 = vmatpush1.bf16.msra.mxu0 %v2378_v24  ;;  %1859 = vmatpush1.bf16.msra.mxu1 %v2394_v40 }
 0x36a   :  { %1829 = vmatprep.subr.bf16.mxu0 %v2381_v27  ;;  %1861 = vmatprep.subr.bf16.mxu1 %v2397_v41 }
 0x36d   :  { %1831 = vmatpush1.bf16.msra.mxu0 %v2390_v39  ;;  %1863 = vmatpush1.bf16.msra.mxu1 %v2401_v47 }
 0x36e   :  { %1865 = vmatprep.subr.bf16.mxu0 %v2309_v4  ;;  %1897 = vmatprep.subr.bf16.mxu1 %v2322_v22 }
 0x423   :  { %v699_v44 = vpop.f32.mrb[6].mxu0  ;;  %v770_v49 = vpop.f32.mrb[6].mxu1 }
 0x424   :  { %v775_v50 = vadd.f32 %v699_v44, %v629_v34  ;;  %v701_v51 = vpop.f32.mrb[7].mxu0  ;;  %v772_v53 = vpop.f32.mrb[7].mxu1  ;;  %v777_v2 = vadd.f32 %v770_v49, %v631_v61  ;;  %v805_v34 = vld [vmem:[#allocation2 + $0x88] sm:$0xff] }
 0x425   :  { %v776_v54 = vadd.f32 %v701_v51, %v630_v35  ;;  %v778_v60 = vadd.f32 %v772_v53, %v632_v59 }
 0x426   :  { %v1529_v56 = vmul.f32 -1.442695, %v775_v50 }
 0x427   :  { %v1530_v57 = vmul.f32 -1.442695, %v776_v54  ;;  %v1531_v63 = vmul.f32 -1.442695, %v778_v60  ;;  %v806_v60 = vld [vmem:[#allocation2 + $0x90] sm:$0xff] }
 0x428   :  { %2110 = vpow2.f32 %v1529_v56 }
 0x429   :  { %2112 = vpow2.f32 %v1530_v57  ;;  %v807_v57 = vld [vmem:[#allocation2 + $0x98] sm:$0xff] }
 0x42a   :  { %2114 = vpow2.f32 %v1531_v63 }
 0x42b   :  { %2116 = vtanh.f32 %v777_v2 }
 0x432   :  { %v2111_v3 = vpop.eup %2110 }
 0x433   :  { %v2113_v5 = vpop.eup %2112  ;;  %v782_v6 = vadd.f32 1.0, %v2111_v3 }
 0x434   :  { %v788_v11 = vadd.f32 1.0, %v2113_v5  ;;  %v2115_v12 = vpop.eup %2114 }
 0x435   :  { %2118 = vrcp.f32 %v782_v6  ;;  %v2117_v13 = vpop.eup %2116  ;;  %v795_v21 = vadd.f32 1.0, %v2115_v12 }
 0x436   :  { %2120 = vrcp.f32 %v788_v11 }
 0x437   :  { %2122 = vrcp.f32 %v795_v21 }
 0x43f   :  { %v2119_v16 = vpop.eup %2118 }
 0x440   :  { %v2121_v19 = vpop.eup %2120  ;;  %v799_v20 = vmul.f32 %v2119_v16, %v2117_v13 }
 0x441   :  { %v798_v23 = vmul.f32 %v2121_v19, %v2519_v29  ;;  %v2123_v36 = vpop.eup %2122  ;;  %v804_v29 = vld [vmem:[#allocation2 + $0x80] sm:$0xff] }
 0x443   :  { %v2557_v28 = vadd.f32 %v799_v20, %v798_v23 }
 0x445   :  { %2124 = vtanh.f32 %v2557_v28 }
 0x44f   :  { %v2125_v38 = vpop.eup %2124 }
 0x450   :  { %v802_v43 = vmul.f32 %v2125_v38, %v2123_v36 }
 0x452   :  { %873 = vmatmul.mubr.f32.vlgmr.msra.gmra.mrb[8].mxu0 %v802_v43  ;;  %944 = vmatmul.mubr.f32.vlgmr.msra.gmra.mrb[8].mxu1 %v802_v43 }
 0x453   :  { %1867 = vmatpush1.bf16.msra.mxu0 %v2311_v8  ;;  %1899 = vmatpush1.bf16.msra.mxu1 %v2324_v25 }
 0x454   :  { %1869 = vmatprep.subr.bf16.mxu0 %v2313_v9  ;;  %1901 = vmatprep.subr.bf16.mxu1 %v2334_v33 }
 0x455   :  { %1047 = vmatprep.mubr.f32.mxu0 %v2266_v0  ;;  %1118 = vmatprep.mubr.f32.mxu1 %v2266_v0 }
 0x457   :  { %1871 = vmatpush1.bf16.msra.mxu0 %v2317_v14  ;;  %1903 = vmatpush1.bf16.msra.mxu1 %v2336_v37 }
 0x458   :  { %1873 = vmatprep.subr.bf16.mxu0 %v2320_v17  ;;  %1905 = vmatprep.subr.bf16.mxu1 %v2342_v45 }
 0x45b   :  { %1875 = vmatpush1.bf16.msra.mxu0 %v2327_v26  ;;  %1907 = vmatpush1.bf16.msra.mxu1 %v2348_v48 }
 0x45c   :  { %1877 = vmatprep.subr.bf16.mxu0 %v2331_v30  ;;  %1909 = vmatprep.subr.bf16.mxu1 %v2351_v52 }
 0x45f   :  { %1879 = vmatpush1.bf16.msra.mxu0 %v2340_v42  ;;  %1911 = vmatpush1.bf16.msra.mxu1 %v2360_v62 }
 0x460   :  { %1881 = vmatprep.subr.bf16.mxu0 %v2345_v46  ;;  %1913 = vmatprep.subr.bf16.mxu1 %v2363_v1 }
 0x463   :  { %1883 = vmatpush1.bf16.msra.mxu0 %v2354_v55  ;;  %1915 = vmatpush1.bf16.msra.mxu1 %v2372_v15 }
 0x464   :  { %1885 = vmatprep.subr.bf16.mxu0 %v2357_v58  ;;  %1917 = vmatprep.subr.bf16.mxu1 %v2375_v18 }
 0x467   :  { %1887 = vmatpush1.bf16.msra.mxu0 %v2366_v7  ;;  %1919 = vmatpush1.bf16.msra.mxu1 %v2384_v31 }
 0x468   :  { %1889 = vmatprep.subr.bf16.mxu0 %v2369_v10  ;;  %1921 = vmatprep.subr.bf16.mxu1 %v2387_v32 }
 0x46b   :  { %1891 = vmatpush1.bf16.msra.mxu0 %v2378_v24  ;;  %1923 = vmatpush1.bf16.msra.mxu1 %v2394_v40 }
 0x46c   :  { %1893 = vmatprep.subr.bf16.mxu0 %v2381_v27  ;;  %1925 = vmatprep.subr.bf16.mxu1 %v2397_v41 }
 0x46f   :  { %1895 = vmatpush1.bf16.msra.mxu0 %v2390_v39  ;;  %1927 = vmatpush1.bf16.msra.mxu1 %v2401_v47 }
 0x470   :  { %1929 = vmatprep.subr.bf16.mxu0 %v2309_v4  ;;  %1961 = vmatprep.subr.bf16.mxu1 %v2322_v22 }
 0x525   :  { %v874_v35 = vpop.f32.mrb[8].mxu0  ;;  %v945_v44 = vpop.f32.mrb[8].mxu1 }
 0x526   :  { %v950_v49 = vadd.f32 %v874_v35, %v804_v29  ;;  %v876_v50 = vpop.f32.mrb[9].mxu0  ;;  %v947_v51 = vpop.f32.mrb[9].mxu1  ;;  %v952_v63 = vadd.f32 %v945_v44, %v806_v60  ;;  %v980_v29 = vld [vmem:[#allocation2 + $0xa8] sm:$0xff] }
 0x527   :  { %v951_v53 = vadd.f32 %v876_v50, %v805_v34  ;;  %v953_v59 = vadd.f32 %v947_v51, %v807_v57 }
 0x528   :  { %v1532_v54 = vmul.f32 -1.442695, %v950_v49 }
 0x529   :  { %v1533_v56 = vmul.f32 -1.442695, %v951_v53  ;;  %v1534_v61 = vmul.f32 -1.442695, %v953_v59  ;;  %v981_v59 = vld [vmem:[#allocation2 + $0xb0] sm:$0xff] }
 0x52a   :  { %2126 = vpow2.f32 %v1532_v54 }
 0x52b   :  { %2128 = vpow2.f32 %v1533_v56  ;;  %v982_v56 = vld [vmem:[#allocation2 + $0xb8] sm:$0xff] }
 0x52c   :  { %2130 = vpow2.f32 %v1534_v61 }
 0x52d   :  { %2132 = vtanh.f32 %v952_v63 }
 0x534   :  { %v2127_v2 = vpop.eup %2126 }
 0x535   :  { %v2129_v3 = vpop.eup %2128  ;;  %v957_v5 = vadd.f32 1.0, %v2127_v2 }
 0x536   :  { %v963_v6 = vadd.f32 1.0, %v2129_v3  ;;  %v2131_v11 = vpop.eup %2130 }
 0x537   :  { %2134 = vrcp.f32 %v957_v5  ;;  %v2133_v12 = vpop.eup %2132  ;;  %v970_v20 = vadd.f32 1.0, %v2131_v11 }
 0x538   :  { %2136 = vrcp.f32 %v963_v6 }
 0x539   :  { %2138 = vrcp.f32 %v970_v20 }
 0x541   :  { %v2135_v13 = vpop.eup %2134 }
 0x542   :  { %v2137_v16 = vpop.eup %2136  ;;  %v974_v19 = vmul.f32 %v2135_v13, %v2133_v12 }
 0x543   :  { %v973_v21 = vmul.f32 %v2137_v16, %v2557_v28  ;;  %v2139_v36 = vpop.eup %2138  ;;  %v979_v28 = vld [vmem:[#allocation2 + $0xa0] sm:$0xff] }
 0x545   :  { %v2595_v23 = vadd.f32 %v974_v19, %v973_v21 }
 0x547   :  { %2140 = vtanh.f32 %v2595_v23 }
 0x551   :  { %v2141_v38 = vpop.eup %2140 }
 0x552   :  { %v977_v43 = vmul.f32 %v2141_v38, %v2139_v36 }
 0x554   :  { %1048 = vmatmul.mubr.f32.vlgmr.msra.gmra.mrb[10].mxu0 %v977_v43  ;;  %1119 = vmatmul.mubr.f32.vlgmr.msra.gmra.mrb[10].mxu1 %v977_v43 }
 0x555   :  { %1931 = vmatpush1.bf16.msra.mxu0 %v2311_v8  ;;  %1963 = vmatpush1.bf16.msra.mxu1 %v2324_v25 }
 0x556   :  { %1933 = vmatprep.subr.bf16.mxu0 %v2313_v9  ;;  %1965 = vmatprep.subr.bf16.mxu1 %v2334_v33 }
 0x557   :  { %1222 = vmatprep.mubr.f32.mxu0 %v2266_v0  ;;  %1293 = vmatprep.mubr.f32.mxu1 %v2266_v0 }
 0x559   :  { %1935 = vmatpush1.bf16.msra.mxu0 %v2317_v14  ;;  %1967 = vmatpush1.bf16.msra.mxu1 %v2336_v37 }
 0x55a   :  { %1937 = vmatprep.subr.bf16.mxu0 %v2320_v17  ;;  %1969 = vmatprep.subr.bf16.mxu1 %v2342_v45 }
 0x55d   :  { %1939 = vmatpush1.bf16.msra.mxu0 %v2327_v26  ;;  %1971 = vmatpush1.bf16.msra.mxu1 %v2348_v48 }
 0x55e   :  { %1941 = vmatprep.subr.bf16.mxu0 %v2331_v30  ;;  %1973 = vmatprep.subr.bf16.mxu1 %v2351_v52 }
 0x561   :  { %1943 = vmatpush1.bf16.msra.mxu0 %v2340_v42  ;;  %1975 = vmatpush1.bf16.msra.mxu1 %v2360_v62 }
 0x562   :  { %1945 = vmatprep.subr.bf16.mxu0 %v2345_v46  ;;  %1977 = vmatprep.subr.bf16.mxu1 %v2363_v1 }
 0x565   :  { %1947 = vmatpush1.bf16.msra.mxu0 %v2354_v55  ;;  %1979 = vmatpush1.bf16.msra.mxu1 %v2372_v15 }
 0x566   :  { %1949 = vmatprep.subr.bf16.mxu0 %v2357_v58  ;;  %1981 = vmatprep.subr.bf16.mxu1 %v2375_v18 }
 0x569   :  { %1951 = vmatpush1.bf16.msra.mxu0 %v2366_v7  ;;  %1983 = vmatpush1.bf16.msra.mxu1 %v2384_v31 }
 0x56a   :  { %1953 = vmatprep.subr.bf16.mxu0 %v2369_v10  ;;  %1985 = vmatprep.subr.bf16.mxu1 %v2387_v32 }
 0x56d   :  { %1955 = vmatpush1.bf16.msra.mxu0 %v2378_v24  ;;  %1987 = vmatpush1.bf16.msra.mxu1 %v2394_v40 }
 0x56e   :  { %1957 = vmatprep.subr.bf16.mxu0 %v2381_v27  ;;  %1989 = vmatprep.subr.bf16.mxu1 %v2397_v41 }
 0x571   :  { %1959 = vmatpush1.bf16.msra.mxu0 %v2390_v39  ;;  %1991 = vmatpush1.bf16.msra.mxu1 %v2401_v47 }
 0x572   :  { %1993 = vmatprep.subr.bf16.mxu0 %v2309_v4  ;;  %2025 = vmatprep.subr.bf16.mxu1 %v2322_v22 }
 0x627   :  { %v1049_v34 = vpop.f32.mrb[10].mxu0  ;;  %v1120_v35 = vpop.f32.mrb[10].mxu1 }
 0x628   :  { %v1125_v44 = vadd.f32 %v1049_v34, %v979_v28  ;;  %v1051_v49 = vpop.f32.mrb[11].mxu0  ;;  %v1122_v50 = vpop.f32.mrb[11].mxu1  ;;  %v1127_v61 = vadd.f32 %v1120_v35, %v981_v59 }
 0x629   :  { %v1126_v51 = vadd.f32 %v1051_v49, %v980_v29  ;;  %v1128_v57 = vadd.f32 %v1122_v50, %v982_v56  ;;  %v1332_v50 = vld [vmem:[#allocation2 + $0xf8] sm:$0xff] }
 0x62a   :  { %v1535_v53 = vmul.f32 -1.442695, %v1125_v44 }
 0x62b   :  { %v1536_v54 = vmul.f32 -1.442695, %v1126_v51  ;;  %v1537_v60 = vmul.f32 -1.442695, %v1128_v57 }
 0x62c   :  { %2142 = vpow2.f32 %v1535_v53  ;;  %v1331_v53 = vld [vmem:[#allocation2 + $0xf0] sm:$0xff] }
 0x62d   :  { %2144 = vpow2.f32 %v1536_v54 }
 0x62e   :  { %2146 = vpow2.f32 %v1537_v60 }
 0x62f   :  { %2148 = vtanh.f32 %v1127_v61 }
 0x636   :  { %v2143_v4 = vpop.eup %2142 }
 0x637   :  { %v2145_v63 = vpop.eup %2144  ;;  %v1132_v22 = vadd.f32 1.0, %v2143_v4 }
 0x638   :  { %v1138_v2 = vadd.f32 1.0, %v2145_v63  ;;  %v2147_v3 = vpop.eup %2146 }
 0x639   :  { %2150 = vrcp.f32 %v1132_v22  ;;  %v2149_v5 = vpop.eup %2148  ;;  %v1145_v13 = vadd.f32 1.0, %v2147_v3 }
 0x63a   :  { %2152 = vrcp.f32 %v1138_v2 }
 0x63b   :  { %2154 = vrcp.f32 %v1145_v13 }
 0x643   :  { %v2151_v6 = vpop.eup %2150 }
 0x644   :  { %v2153_v11 = vpop.eup %2152  ;;  %v1149_v12 = vmul.f32 %v2151_v6, %v2149_v5 }
 0x645   :  { %v1148_v16 = vmul.f32 %v2153_v11, %v2595_v23  ;;  %v2155_v20 = vpop.eup %2154  ;;  %v1330_v23 = vld [vmem:[#allocation2 + $0xe8] sm:$0xff] }
 0x647   :  { %v2633_v19 = vadd.f32 %v1149_v12, %v1148_v16 }
 0x649   :  { %2156 = vtanh.f32 %v2633_v19 }
 0x653   :  { %v2157_v21 = vpop.eup %2156 }
 0x654   :  { %v1152_v36 = vmul.f32 %v2157_v21, %v2155_v20 }
 0x656   :  { %1223 = vmatmul.mubr.f32.vlgmr.msra.gmra.mrb[12].mxu0 %v1152_v36  ;;  %1294 = vmatmul.mubr.f32.vlgmr.msra.gmra.mrb[12].mxu1 %v1152_v36 }
 0x657   :  { %1995 = vmatpush1.bf16.msra.mxu0 %v2311_v8  ;;  %2027 = vmatpush1.bf16.msra.mxu1 %v2324_v25  ;;  %v1155_v8 = vld [vmem:[#allocation2 + $0xc8] sm:$0xff] }
 0x658   :  { %1997 = vmatprep.subr.bf16.mxu0 %v2313_v9  ;;  %2029 = vmatprep.subr.bf16.mxu1 %v2334_v33 }
 0x659   :  { %1397 = vmatprep.mubr.f32.mxu0 %v2266_v0  ;;  %1468 = vmatprep.mubr.f32.mxu1 %v2266_v0  ;;  %v1154_v0 = vld [vmem:[#allocation2 + $0xc0] sm:$0xff] }
 0x65b   :  { %1999 = vmatpush1.bf16.msra.mxu0 %v2317_v14  ;;  %2031 = vmatpush1.bf16.msra.mxu1 %v2336_v37 }
 0x65c   :  { %2001 = vmatprep.subr.bf16.mxu0 %v2320_v17  ;;  %2033 = vmatprep.subr.bf16.mxu1 %v2342_v45 }
 0x65f   :  { %2003 = vmatpush1.bf16.msra.mxu0 %v2327_v26  ;;  %2035 = vmatpush1.bf16.msra.mxu1 %v2348_v48 }
 0x660   :  { %2005 = vmatprep.subr.bf16.mxu0 %v2331_v30  ;;  %2037 = vmatprep.subr.bf16.mxu1 %v2351_v52 }
 0x663   :  { %2007 = vmatpush1.bf16.msra.mxu0 %v2340_v42  ;;  %2039 = vmatpush1.bf16.msra.mxu1 %v2360_v62  ;;  %v1157_v42 = vld [vmem:[#allocation2 + $0xd8] sm:$0xff] }
 0x664   :  { %2009 = vmatprep.subr.bf16.mxu0 %v2345_v46  ;;  %2041 = vmatprep.subr.bf16.mxu1 %v2363_v1  ;;  %v1156_v46 = vld [vmem:[#allocation2 + $0xd0] sm:$0xff] }
 0x667   :  { %2011 = vmatpush1.bf16.msra.mxu0 %v2354_v55  ;;  %2043 = vmatpush1.bf16.msra.mxu1 %v2372_v15 }
 0x668   :  { %2013 = vmatprep.subr.bf16.mxu0 %v2357_v58  ;;  %2045 = vmatprep.subr.bf16.mxu1 %v2375_v18 }
 0x66b   :  { %2015 = vmatpush1.bf16.msra.mxu0 %v2366_v7  ;;  %2047 = vmatpush1.bf16.msra.mxu1 %v2384_v31 }
 0x66c   :  { %2017 = vmatprep.subr.bf16.mxu0 %v2369_v10  ;;  %2049 = vmatprep.subr.bf16.mxu1 %v2387_v32 }
 0x66f   :  { %2019 = vmatpush1.bf16.msra.mxu0 %v2378_v24  ;;  %2051 = vmatpush1.bf16.msra.mxu1 %v2394_v40 }
 0x670   :  { %2021 = vmatprep.subr.bf16.mxu0 %v2381_v27  ;;  %2053 = vmatprep.subr.bf16.mxu1 %v2397_v41 }
 0x673   :  { %2023 = vmatpush1.bf16.msra.mxu0 %v2390_v39  ;;  %2055 = vmatpush1.bf16.msra.mxu1 %v2401_v47  ;;  %v1329_v47 = vld [vmem:[#allocation2 + $0xe0] sm:$0xff] }
 0x729   :  { %v1224_v9 = vpop.f32.mrb[12].mxu0  ;;  %v1295_v14 = vpop.f32.mrb[12].mxu1 }
 0x72a   :  { %v1300_v17 = vadd.f32 %v1224_v9, %v1154_v0  ;;  %v1226_v25 = vpop.f32.mrb[13].mxu0  ;;  %v1297_v26 = vpop.f32.mrb[13].mxu1  ;;  %v1302_v52 = vadd.f32 %v1295_v14, %v1156_v46 }
 0x72b   :  { %v1301_v30 = vadd.f32 %v1226_v25, %v1155_v8  ;;  %v1303_v45 = vadd.f32 %v1297_v26, %v1157_v42 }
 0x72c   :  { %v1538_v33 = vmul.f32 -1.442695, %v1300_v17 }
 0x72d   :  { %v1539_v37 = vmul.f32 -1.442695, %v1301_v30  ;;  %v1540_v48 = vmul.f32 -1.442695, %v1303_v45 }
 0x72e   :  { %2158 = vpow2.f32 %v1538_v33 }
 0x72f   :  { %2160 = vpow2.f32 %v1539_v37 }
 0x730   :  { %2162 = vpow2.f32 %v1540_v48 }
 0x731   :  { %2164 = vtanh.f32 %v1302_v52 }
 0x738   :  { %v2159_v55 = vpop.eup %2158 }
 0x739   :  { %v2161_v58 = vpop.eup %2160  ;;  %v1307_v62 = vadd.f32 1.0, %v2159_v55 }
 0x73a   :  { %v1313_v1 = vadd.f32 1.0, %v2161_v58  ;;  %v2163_v7 = vpop.eup %2162 }
 0x73b   :  { %2166 = vrcp.f32 %v1307_v62  ;;  %v2165_v10 = vpop.eup %2164  ;;  %v1320_v27 = vadd.f32 1.0, %v2163_v7 }
 0x73c   :  { %2168 = vrcp.f32 %v1313_v1 }
 0x73d   :  { %2170 = vrcp.f32 %v1320_v27 }
 0x745   :  { %v2167_v15 = vpop.eup %2166 }
 0x746   :  { %v2169_v18 = vpop.eup %2168  ;;  %v1324_v24 = vmul.f32 %v2167_v15, %v2165_v10 }
 0x747   :  { %v1323_v31 = vmul.f32 %v2169_v18, %v2633_v19  ;;  %v2171_v39 = vpop.eup %2170 }
 0x749   :  { %v1325_v32 = vadd.f32 %v1324_v24, %v1323_v31 }
 0x74b   :  { %2172 = vtanh.f32 %v1325_v32 }
 0x755   :  { %v2173_v40 = vpop.eup %2172 }
 0x756   :  { %v1327_v41 = vmul.f32 %v2173_v40, %v2171_v39 }
 0x758   :  { %1398 = vmatmul.mubr.f32.vlgmr.msra.gmra.mrb[14].mxu0 %v1327_v41  ;;  %1469 = vmatmul.mubr.f32.vlgmr.msra.gmra.mrb[14].mxu1 %v1327_v41 }
 0x82b   :  { %v1399_v38 = vpop.f32.mrb[14].mxu0  ;;  %v1470_v43 = vpop.f32.mrb[14].mxu1 }
 0x82c   :  { %v1475_v28 = vadd.f32 %v1399_v38, %v1329_v47  ;;  %v1401_v29 = vpop.f32.mrb[15].mxu0  ;;  %v1472_v34 = vpop.f32.mrb[15].mxu1  ;;  %v1477_v56 = vadd.f32 %v1470_v43, %v1331_v53 }
 0x82d   :  { %v1476_v35 = vadd.f32 %v1401_v29, %v1330_v23  ;;  %v1478_v51 = vadd.f32 %v1472_v34, %v1332_v50 }
 0x82e   :  { %v1541_v44 = vmul.f32 -1.442695, %v1475_v28 }
 0x82f   :  { %v1542_v49 = vmul.f32 -1.442695, %v1476_v35  ;;  %v1543_v54 = vmul.f32 -1.442695, %v1478_v51 }
 0x830   :  { %2174 = vpow2.f32 %v1541_v44 }
 0x831   :  { %2176 = vpow2.f32 %v1542_v49 }
 0x832   :  { %2178 = vpow2.f32 %v1543_v54 }
 0x833   :  { %2180 = vtanh.f32 %v1477_v56 }
 0x83a   :  { %v2175_v57 = vpop.eup %2174 }
 0x83b   :  { %v2177_v59 = vpop.eup %2176  ;;  %v1482_v60 = vadd.f32 1.0, %v2175_v57 }
 0x83c   :  { %v1488_v61 = vadd.f32 1.0, %v2177_v59  ;;  %v2179_v4 = vpop.eup %2178 }
 0x83d   :  { %2182 = vrcp.f32 %v1482_v60  ;;  %v2181_v63 = vpop.eup %2180  ;;  %v1495_v5 = vadd.f32 1.0, %v2179_v4 }
 0x83e   :  { %2184 = vrcp.f32 %v1488_v61 }
 0x83f   :  { %2186 = vrcp.f32 %v1495_v5 }
 0x847   :  { %v2183_v22 = vpop.eup %2182 }
 0x848   :  { %v2185_v2 = vpop.eup %2184  ;;  %v1499_v3 = vmul.f32 %v2183_v22, %v2181_v63 }
 0x849   :  { %v1498_v6 = vmul.f32 %v2185_v2, %v1325_v32  ;;  %v2187_v12 = vpop.eup %2186 }
 0x84b   :  { %v1500_v11 = vadd.f32 %v1499_v3, %v1498_v6 }
 0x84d   :  { %2188 = vtanh.f32 %v1500_v11 }
 0x857   :  { %v2189_v13 = vpop.eup %2188 }
 0x858   :  { %v1502_v16 = vmul.f32 %v2189_v13, %v2187_v12 }
 0x85a   :  { %1503 = vst [vmem:[#allocation7] sm:$0xff] %v1502_v16 }
 0x85b   :  { %2245 = shalt.err (!%p2242_p6)
}
 0x85c   :  { %s2246_s10 = scalar_lea.hbm %s2683_s2, 128 }
 0x85d   :  { %p2247_p7 = scmp.ne.s32.totalorder %s2683_s2, %s2246_s10  ;;  %p2250_p8 = scmp.lt.u32.totalorder %s2246_s10, %s2683_s2 }
 0x85f   :  { %p2252_p9 = pnand %p2250_p8, %p2247_p7 }
 0x861   :  { %2255 = shalt.err (!%p2252_p9)
}
 0x862   :  { %1513 = dma.vmem_to_hbm [thread:$0]  %s1511_s6, 128, %s2683_s2, [#allocation4]  }
 0x863   :  { %2260 = dma.done.wait [#allocation4], 128  }
 0x864   :  { %2261 = vsyncadd [#allocation4], 4294967168 }
 0x865   :  { %1517 = vsyncpa [#allocation3], 1 }
 0x866   :  { %1518 = vsyncpa [#allocation6], 1 }
 0x867   :  { %1519 = vsyncpa [#allocation4], 1 }

</bundles_post_ra>
